<compile_context>
chip_gen: v7x
topology: tpu7x:2x2x1
jax: 0.10.0
libtpu: 0.0.40
codegen_flags: <defaults>
</compile_context>

<pallas_src>
import functools
import math

import jax
import jax.numpy as jnp
import numpy as np
from jax.experimental import pallas as pl
from jax.experimental.pallas import tpu as pltpu


def _round_up(x, m):
    return ((x + m - 1) // m) * m


# ----------------------------------------------------------------------------
# Pallas kernel: fused bidirectional GRU recurrence, time-chunked.
#   grid = (num_dir, num_chunks); direction axis is "parallel",
#   chunk axis is "arbitrary" (serial recurrence, hidden carried in scratch).
# ----------------------------------------------------------------------------
def _gru_fused_kernel(HP, Tc, gi_ref, m_ref, whh_ref, bhh_ref, o_ref, h_sc):
    d = pl.program_id(0)                      # 0 = forward, 1 = backward

    @pl.when(pl.program_id(1) == 0)
    def _():
        h_sc[...] = jnp.zeros_like(h_sc)

    B = h_sc.shape[0]
    whh = whh_ref[...]                                       # (HP, 3*HP), resident
    bhh = jnp.broadcast_to(bhh_ref[...], (B, 3 * HP))        # hoist broadcast out of loop

    def step(i, carry):
        # forward direction walks the chunk 0..Tc-1, backward walks Tc-1..0
        tt = i + d * (Tc - 1 - 2 * i)
        gi = gi_ref[tt]                       # (B, 3*HP)  (b_ih already folded in)
        m = m_ref[tt]                         # (B, 1)     1.0 where t < length
        h_prev = h_sc[...]                    # (B, HP)

        gh = jnp.dot(h_prev, whh, preferred_element_type=jnp.float32) + bhh

        # lane-aligned gate slices (each HP wide, HP % 128 == 0)
        r = jax.nn.sigmoid(gi[:, 0:HP] + gh[:, 0:HP])
        z = jax.nn.sigmoid(gi[:, HP:2 * HP] + gh[:, HP:2 * HP])
        n = jnp.tanh(gi[:, 2 * HP:3 * HP] + r * gh[:, 2 * HP:3 * HP])
        h_new = (1.0 - z) * n + z * h_prev

        # carry hidden only for still-valid sequences; emit zeros for padding
        h_sc[...] = m * h_new + (1.0 - m) * h_prev
        o_ref[tt] = (h_new * m).astype(o_ref.dtype)
        return carry

    jax.lax.fori_loop(0, Tc, step, 0, unroll=True)


def gru_layer_pallas(gi, mask_tb1, whh, bhh, time_chunk):
    """Run one (bi)directional GRU layer.

    gi:       (num_dir, Tp, B, 3*HP)  precomputed X @ W_ih^T + b_ih (padded gates)
    mask_tb1: (Tp, B, 1)              validity mask
    whh:      (num_dir, HP, 3*HP)     transposed, gate-padded recurrent weights
    bhh:      (num_dir, 1, 3*HP)
    returns   (num_dir, Tp, B, HP)
    """
    num_dir, Tp, B, G = gi.shape
    HP = G // 3
    Tc = time_chunk
    nc = Tp // Tc

    def tmap(d, c):
        # forward (d=0): chunk c ; backward (d=1): chunk nc-1-c
        return c + d * (nc - 1 - 2 * c)

    kernel = functools.partial(_gru_fused_kernel, HP, Tc)

    return pl.pallas_call(
        kernel,
        out_shape=jax.ShapeDtypeStruct((num_dir, Tp, B, HP), jnp.float32),
        grid_spec=pltpu.PrefetchScalarGridSpec(
            num_scalar_prefetch=0,
            grid=(num_dir, nc),
            in_specs=[
                pl.BlockSpec((None, Tc, B, G), lambda d, c: (d, tmap(d, c), 0, 0)),
                pl.BlockSpec((Tc, B, 1), lambda d, c: (tmap(d, c), 0, 0)),
                pl.BlockSpec((None, HP, G), lambda d, c: (d, 0, 0)),
                pl.BlockSpec((None, 1, G), lambda d, c: (d, 0, 0)),
            ],
            out_specs=pl.BlockSpec((None, Tc, B, HP),
                                   lambda d, c: (d, tmap(d, c), 0, 0)),
            scratch_shapes=[pltpu.VMEM((B, HP), jnp.float32)],
        ),
        compiler_params=pltpu.CompilerParams(
            dimension_semantics=("parallel", "arbitrary")),
    )(gi, mask_tb1, whh, bhh)


# ----------------------------------------------------------------------------
# Weight repacking: transpose + pad each gate block to HP lanes.
# ----------------------------------------------------------------------------
def _pad_gate_weights(w_ih, w_hh, b_ih, b_hh, H, HP):
    """w_ih: (3H, D), w_hh: (3H, H) -> (D, 3HP), (HP, 3HP), (3HP,), (3HP,)."""
    D = w_ih.shape[1]
    wih_t = jnp.zeros((D, 3 * HP), jnp.float32)
    whh_t = jnp.zeros((HP, 3 * HP), jnp.float32)
    bih = jnp.zeros((3 * HP,), jnp.float32)
    bhh = jnp.zeros((3 * HP,), jnp.float32)
    for g in range(3):
        wih_t = wih_t.at[:, g * HP:g * HP + H].set(w_ih[g * H:(g + 1) * H, :].T)
        whh_t = whh_t.at[:H, g * HP:g * HP + H].set(w_hh[g * H:(g + 1) * H, :].T)
        bih = bih.at[g * HP:g * HP + H].set(b_ih[g * H:(g + 1) * H])
        bhh = bhh.at[g * HP:g * HP + H].set(b_hh[g * H:(g + 1) * H])
    return wih_t, whh_t, bih, bhh


def _stack_dir_params(params, layer, num_dir, H, HP):
    wih_l, whh_l, bih_l, bhh_l = [], [], [], []
    for direction in range(num_dir):
        w_ih, w_hh, b_ih, b_hh = params[(layer, direction)]
        wih_t, whh_t, bih, bhh = _pad_gate_weights(w_ih, w_hh, b_ih, b_hh, H, HP)
        wih_l.append(wih_t)
        whh_l.append(whh_t)
        bih_l.append(bih)
        bhh_l.append(bhh)
    return (jnp.stack(wih_l), jnp.stack(whh_l),
            jnp.stack(bih_l), jnp.stack(bhh_l)[:, None, :])


# ----------------------------------------------------------------------------
# Module forward: equivalent of GRU.forward(text, text_len).
# ----------------------------------------------------------------------------
def gru_forward(text, text_len, params, hidden_dim, num_layers, bidirectional,
                time_chunk=4):
    """text: (B, T, input_dim) batch-first; text_len: (B,) int32.
    Returns (B, T, hidden_dim * num_directions)."""
    B, T, _ = text.shape
    num_dir = 2 if bidirectional else 1
    H = hidden_dim
    HP = _round_up(H, 128)
    Tc = min(time_chunk, T)
    Tp = _round_up(T, Tc)

    mask = (jnp.arange(T)[None, :] < text_len[:, None]).astype(jnp.float32)   # (B, T)
    mask_tb1 = jnp.transpose(mask)[:, :, None]                                # (T, B, 1)
    if Tp != T:
        mask_tb1 = jnp.pad(mask_tb1, ((0, Tp - T), (0, 0), (0, 0)))

    # time-major once at the module boundary (stays time-major across layers)
    x = jnp.transpose(text, (1, 0, 2)).astype(jnp.float32)                    # (T, B, D)
    if Tp != T:
        x = jnp.pad(x, ((0, Tp - T), (0, 0), (0, 0)))

    layer_in = x
    for layer in range(num_layers):
        wih_s, whh_s, bih_s, bhh_s = _stack_dir_params(params, layer, num_dir, H, HP)
        # Hoisted time-independent input projection: one big matmul per direction,
        # with b_ih folded in.  (num_dir, Tp, B, 3*HP)
        gi = jnp.einsum('tbd,kdg->ktbg', layer_in, wih_s,
                        precision=jax.lax.Precision.HIGHEST) + bih_s[:, None, None, :]
        y = gru_layer_pallas(gi, mask_tb1, whh_s, bhh_s, Tc)   # (num_dir, Tp, B, HP)
        y = y[..., :H]                                         # drop lane padding
        layer_in = (jnp.concatenate([y[0], y[1]], axis=-1)
                    if num_dir == 2 else y[0])                 # (Tp, B, H*num_dir)
        # TODO(synk): nn.GRU applies dropout between layers in training mode.
    out = layer_in[:T]
    return jnp.transpose(out, (1, 0, 2))


# ----------------------------------------------------------------------------
# Pure-JAX reference (same math, lax.scan) for the correctness check.
# ----------------------------------------------------------------------------
def reverse_padded(x, lengths):
    """Reverse each sequence within its valid length. x: (B, T, D)."""
    T = x.shape[1]
    t = jnp.arange(T)[None, :]
    ln = lengths[:, None]
    idx = jnp.where(t < ln, ln - 1 - t, t)
    return jnp.take_along_axis(x, idx[:, :, None], axis=1)


def _gru_layer_ref(x, mask, w_ih, w_hh, b_ih, b_hh):
    H = w_hh.shape[1]
    hi = jax.lax.Precision.HIGHEST

    def step(h, inputs):
        x_t, m_t = inputs
        gi = jnp.dot(x_t, w_ih.T, precision=hi) + b_ih
        gh = jnp.dot(h, w_hh.T, precision=hi) + b_hh
        r = jax.nn.sigmoid(gi[:, :H] + gh[:, :H])
        z = jax.nn.sigmoid(gi[:, H:2 * H] + gh[:, H:2 * H])
        n = jnp.tanh(gi[:, 2 * H:] + r * gh[:, 2 * H:])
        h_new = (1 - z) * n + z * h
        m = m_t[:, None]
        return m * h_new + (1 - m) * h, h_new * m

    B = x.shape[0]
    h0 = jnp.zeros((B, H), x.dtype)
    _, ys = jax.lax.scan(step, h0, (jnp.transpose(x, (1, 0, 2)),
                                    jnp.transpose(mask, (1, 0))))
    return jnp.transpose(ys, (1, 0, 2))


def gru_forward_ref(text, text_len, params, hidden_dim, num_layers, bidirectional):
    num_dir = 2 if bidirectional else 1
    T = text.shape[1]
    mask = (jnp.arange(T)[None, :] < text_len[:, None]).astype(text.dtype)
    layer_in = text
    for layer in range(num_layers):
        outs = []
        for direction in range(num_dir):
            w_ih, w_hh, b_ih, b_hh = params[(layer, direction)]
            inp = reverse_padded(layer_in, text_len) if direction == 1 else layer_in
            y = _gru_layer_ref(inp, mask, w_ih, w_hh, b_ih, b_hh)
            if direction == 1:
                y = reverse_padded(y, text_len)
            outs.append(y)
        layer_in = jnp.concatenate(outs, axis=-1) if num_dir == 2 else outs[0]
    return layer_in


# ----------------------------------------------------------------------------
def init_gru_params(key, input_dim, hidden_dim, num_layers, bidirectional):
    """Params matching nn.GRU shapes/init (U(-1/sqrt(H), 1/sqrt(H)))."""
    num_dir = 2 if bidirectional else 1
    stdv = 1.0 / math.sqrt(hidden_dim)
    params = {}
    for layer in range(num_layers):
        d_in = input_dim if layer == 0 else hidden_dim * num_dir
        for direction in range(num_dir):
            key, k1, k2, k3, k4 = jax.random.split(key, 5)
            w_ih = jax.random.uniform(k1, (3 * hidden_dim, d_in), jnp.float32, -stdv, stdv)
            w_hh = jax.random.uniform(k2, (3 * hidden_dim, hidden_dim), jnp.float32, -stdv, stdv)
            b_ih = jax.random.uniform(k3, (3 * hidden_dim,), jnp.float32, -stdv, stdv)
            b_hh = jax.random.uniform(k4, (3 * hidden_dim,), jnp.float32, -stdv, stdv)
            params[(layer, direction)] = (w_ih, w_hh, b_ih, b_hh)
    return params


if __name__ == "__main__":
    B, T, INPUT_DIM, HIDDEN_DIM = 4, 8, 16, 32
    NUM_LAYERS, BIDIRECTIONAL, DROPOUT = 2, True, 0.0
    TIME_CHUNK = 4   # 2 chunks -> exercises cross-chunk carry + reversed index_map

    key = jax.random.PRNGKey(0)
    k_x, k_p = jax.random.split(key)
    text = jax.random.normal(k_x, (B, T, INPUT_DIM), dtype=jnp.float32)
    # max length == T so the output time dim matches max_text_len.
    text_len = jnp.array([8, 5, 3, 1], dtype=jnp.int32)

    params = init_gru_params(k_p, INPUT_DIM, HIDDEN_DIM, NUM_LAYERS, BIDIRECTIONAL)

    out = gru_forward(text, text_len, params, HIDDEN_DIM, NUM_LAYERS, BIDIRECTIONAL,
                      time_chunk=TIME_CHUNK)
    out = jax.block_until_ready(out)

    ref = gru_forward_ref(text, text_len, params, HIDDEN_DIM, NUM_LAYERS, BIDIRECTIONAL)
    ref = jax.block_until_ready(ref)

    num_dir = 2 if BIDIRECTIONAL else 1
    assert out.shape == (B, T, HIDDEN_DIM * num_dir), out.shape
    np.testing.assert_allclose(np.asarray(out), np.asarray(ref), rtol=2e-5, atol=2e-5)

    print("KERNEL_OK")
</pallas_src>

<mosaic_0001>
module attributes {stable_mosaic.version = 11 : i64} {
  func.func @_gru_fused_kernel(%arg0: i32, %arg1: i32, %arg2: memref<1x4x4x384xf32, #tpu.memory_space<vmem>>, %arg3: memref<4x4x1xf32, #tpu.memory_space<vmem>>, %arg4: memref<1x128x384xf32, #tpu.memory_space<vmem>>, %arg5: memref<1x1x384xf32, #tpu.memory_space<vmem>>, %arg6: memref<1x4x4x128xf32, #tpu.memory_space<vmem>>, %arg7: memref<4x128xf32, #tpu.memory_space<vmem>>) attributes {dimension_semantics = [#tpu.dimension_semantics<parallel>, #tpu.dimension_semantics<arbitrary>], iteration_bounds = array<i64: 2, 2>, scalar_prefetch = 0 : i64, scratch_operands = 1 : i64, tpu.core_type = #tpu.core_type<tc>, window_params = [{transform_indices = @transform_0, window_bounds = array<i64: 1, 4, 4, 384>}, {transform_indices = @transform_1, window_bounds = array<i64: 4, 4, 1>}, {transform_indices = @transform_2, window_bounds = array<i64: 1, 128, 384>}, {transform_indices = @transform_3, window_bounds = array<i64: 1, 1, 384>}, {transform_indices = @transform_4, window_bounds = array<i64: 1, 4, 4, 128>}]} {
    %c0_i32 = arith.constant 0 : i32
    %0 = arith.cmpi eq, %arg1, %c0_i32 : i32
    %1 = arith.extui %0 : i1 to i32
    %c0_i32_0 = arith.constant 0 : i32
    %2 = arith.cmpi ne, %1, %c0_i32_0 : i32
    scf.if %2 {
      %cst_82 = arith.constant 0.000000e+00 : f32
      %221 = vector.broadcast %cst_82 : f32 to vector<4x128xf32>
      %c0_83 = arith.constant 0 : index
      %c0_84 = arith.constant 0 : index
      %222 = vector.load %arg7[%c0_83, %c0_84] : memref<4x128xf32, #tpu.memory_space<vmem>>, vector<4x128xf32>
      tpu.vector_store %arg7[%c0_83, %c0_84], %221 {strides = array<i32>} : memref<4x128xf32, #tpu.memory_space<vmem>>, vector<4x128xf32>,
    } else {
    }
    %c0 = arith.constant 0 : index
    %c0_1 = arith.constant 0 : index
    %c0_2 = arith.constant 0 : index
    %3 = vector.load %arg4[%c0, %c0_1, %c0_2] : memref<1x128x384xf32, #tpu.memory_space<vmem>>, vector<1x128x384xf32>
    %4 = vector.shape_cast %3 : vector<1x128x384xf32> to vector<128x384xf32>
    %c0_3 = arith.constant 0 : index
    %c0_4 = arith.constant 0 : index
    %c0_5 = arith.constant 0 : index
    %5 = vector.load %arg5[%c0_3, %c0_4, %c0_5] : memref<1x1x384xf32, #tpu.memory_space<vmem>>, vector<1x1x384xf32>
    %6 = vector.shape_cast %5 : vector<1x1x384xf32> to vector<1x384xf32>
    %7 = vector.shape_cast %6 : vector<1x384xf32> to vector<1x384xf32>
    %8 = vector.broadcast %7 : vector<1x384xf32> to vector<4x384xf32>
    %c0_i32_6 = arith.constant 0 : i32
    %c2_i32 = arith.constant 2 : i32
    %9 = arith.muli %c2_i32, %c0_i32_6 : i32
    %c3_i32 = arith.constant 3 : i32
    %10 = arith.subi %c3_i32, %9 : i32
    %11 = arith.muli %arg0, %10 : i32
    %12 = arith.addi %c0_i32_6, %11 : i32
    %c0_7 = arith.constant 0 : index
    %13 = arith.index_cast %12 : i32 to index
    %c0_8 = arith.constant 0 : index
    %c0_9 = arith.constant 0 : index
    %14 = vector.load %arg2[%c0_7, %13, %c0_8, %c0_9] : memref<1x4x4x384xf32, #tpu.memory_space<vmem>>, vector<1x1x4x384xf32>
    %15 = vector.shape_cast %14 : vector<1x1x4x384xf32> to vector<4x384xf32>
    %16 = arith.index_cast %12 : i32 to index
    %c0_10 = arith.constant 0 : index
    %c0_11 = arith.constant 0 : index
    %17 = vector.load %arg3[%16, %c0_10, %c0_11] : memref<4x4x1xf32, #tpu.memory_space<vmem>>, vector<1x4x1xf32>
    %18 = vector.shape_cast %17 : vector<1x4x1xf32> to vector<4x1xf32>
    %c0_12 = arith.constant 0 : index
    %c0_13 = arith.constant 0 : index
    %19 = vector.load %arg7[%c0_12, %c0_13] : memref<4x128xf32, #tpu.memory_space<vmem>>, vector<4x128xf32>
    %cst = arith.constant dense<0.000000e+00> : vector<4x384xf32>
    %20 = tpu.matmul %19, %4, %cst {dimension_numbers = #tpu.dot_dimension_numbers<[1], [0], [0], [1], [0, 0, 1, 1], [], []>} : vector<4x128xf32>, vector<128x384xf32>, vector<4x384xf32> -> vector<4x384xf32>
    %21 = arith.addf %20, %8 : vector<4x384xf32>
    %22 = vector.extract_strided_slice %15 {offsets = [0, 0], sizes = [4, 128], strides = [1, 1]} : vector<4x384xf32> to vector<4x128xf32>
    %23 = vector.extract_strided_slice %21 {offsets = [0, 0], sizes = [4, 128], strides = [1, 1]} : vector<4x384xf32> to vector<4x128xf32>
    %24 = arith.addf %22, %23 : vector<4x128xf32>
    %25 = arith.negf %24 : vector<4x128xf32>
    %26 = math.exp %25 : vector<4x128xf32>
    %cst_14 = arith.constant 1.000000e+00 : f32
    %27 = vector.broadcast %cst_14 : f32 to vector<4x128xf32>
    %28 = arith.addf %27, %26 : vector<4x128xf32>
    %29 = arith.divf %27, %28 : vector<4x128xf32>
    %30 = vector.extract_strided_slice %15 {offsets = [0, 128], sizes = [4, 128], strides = [1, 1]} : vector<4x384xf32> to vector<4x128xf32>
    %31 = vector.extract_strided_slice %21 {offsets = [0, 128], sizes = [4, 128], strides = [1, 1]} : vector<4x384xf32> to vector<4x128xf32>
    %32 = arith.addf %30, %31 : vector<4x128xf32>
    %33 = arith.negf %32 : vector<4x128xf32>
    %34 = math.exp %33 : vector<4x128xf32>
    %cst_15 = arith.constant 1.000000e+00 : f32
    %35 = vector.broadcast %cst_15 : f32 to vector<4x128xf32>
    %36 = arith.addf %35, %34 : vector<4x128xf32>
    %37 = arith.divf %35, %36 : vector<4x128xf32>
    %38 = vector.extract_strided_slice %15 {offsets = [0, 256], sizes = [4, 128], strides = [1, 1]} : vector<4x384xf32> to vector<4x128xf32>
    %39 = vector.extract_strided_slice %21 {offsets = [0, 256], sizes = [4, 128], strides = [1, 1]} : vector<4x384xf32> to vector<4x128xf32>
    %40 = arith.mulf %29, %39 : vector<4x128xf32>
    %41 = arith.addf %38, %40 : vector<4x128xf32>
    %42 = math.tanh %41 : vector<4x128xf32>
    %cst_16 = arith.constant 1.000000e+00 : f32
    %43 = vector.broadcast %cst_16 : f32 to vector<4x128xf32>
    %44 = arith.subf %43, %37 : vector<4x128xf32>
    %45 = arith.mulf %44, %42 : vector<4x128xf32>
    %46 = arith.mulf %37, %19 : vector<4x128xf32>
    %47 = arith.addf %45, %46 : vector<4x128xf32>
    %48 = vector.broadcast %18 : vector<4x1xf32> to vector<4x128xf32>
    %49 = arith.mulf %48, %47 : vector<4x128xf32>
    %cst_17 = arith.constant 1.000000e+00 : f32
    %50 = vector.broadcast %cst_17 : f32 to vector<4x1xf32>
    %51 = arith.subf %50, %18 : vector<4x1xf32>
    %52 = vector.broadcast %51 : vector<4x1xf32> to vector<4x128xf32>
    %53 = arith.mulf %52, %19 : vector<4x128xf32>
    %54 = arith.addf %49, %53 : vector<4x128xf32>
    %c0_18 = arith.constant 0 : index
    %c0_19 = arith.constant 0 : index
    %55 = vector.load %arg7[%c0_18, %c0_19] : memref<4x128xf32, #tpu.memory_space<vmem>>, vector<4x128xf32>
    tpu.vector_store %arg7[%c0_18, %c0_19], %54 {strides = array<i32>} : memref<4x128xf32, #tpu.memory_space<vmem>>, vector<4x128xf32>,
    %56 = vector.broadcast %18 : vector<4x1xf32> to vector<4x128xf32>
    %57 = arith.mulf %47, %56 : vector<4x128xf32>
    %c0_20 = arith.constant 0 : index
    %58 = arith.index_cast %12 : i32 to index
    %c0_21 = arith.constant 0 : index
    %c0_22 = arith.constant 0 : index
    %59 = vector.load %arg6[%c0_20, %58, %c0_21, %c0_22] : memref<1x4x4x128xf32, #tpu.memory_space<vmem>>, vector<1x1x4x128xf32>
    %60 = vector.shape_cast %59 : vector<1x1x4x128xf32> to vector<4x128xf32>
    %61 = vector.shape_cast %57 : vector<4x128xf32> to vector<1x1x4x128xf32>
    tpu.vector_store %arg6[%c0_20, %58, %c0_21, %c0_22], %61 {strides = array<i32>} : memref<1x4x4x128xf32, #tpu.memory_space<vmem>>, vector<1x1x4x128xf32>,
    %c1_i32 = arith.constant 1 : i32
    %c2_i32_23 = arith.constant 2 : i32
    %62 = arith.muli %c2_i32_23, %c1_i32 : i32
    %c3_i32_24 = arith.constant 3 : i32
    %63 = arith.subi %c3_i32_24, %62 : i32
    %64 = arith.muli %arg0, %63 : i32
    %65 = arith.addi %c1_i32, %64 : i32
    %c0_25 = arith.constant 0 : index
    %66 = arith.index_cast %65 : i32 to index
    %c0_26 = arith.constant 0 : index
    %c0_27 = arith.constant 0 : index
    %67 = vector.load %arg2[%c0_25, %66, %c0_26, %c0_27] : memref<1x4x4x384xf32, #tpu.memory_space<vmem>>, vector<1x1x4x384xf32>
    %68 = vector.shape_cast %67 : vector<1x1x4x384xf32> to vector<4x384xf32>
    %69 = arith.index_cast %65 : i32 to index
    %c0_28 = arith.constant 0 : index
    %c0_29 = arith.constant 0 : index
    %70 = vector.load %arg3[%69, %c0_28, %c0_29] : memref<4x4x1xf32, #tpu.memory_space<vmem>>, vector<1x4x1xf32>
    %71 = vector.shape_cast %70 : vector<1x4x1xf32> to vector<4x1xf32>
    %c0_30 = arith.constant 0 : index
    %c0_31 = arith.constant 0 : index
    %72 = vector.load %arg7[%c0_30, %c0_31] : memref<4x128xf32, #tpu.memory_space<vmem>>, vector<4x128xf32>
    %cst_32 = arith.constant dense<0.000000e+00> : vector<4x384xf32>
    %73 = tpu.matmul %72, %4, %cst_32 {dimension_numbers = #tpu.dot_dimension_numbers<[1], [0], [0], [1], [0, 0, 1, 1], [], []>} : vector<4x128xf32>, vector<128x384xf32>, vector<4x384xf32> -> vector<4x384xf32>
    %74 = arith.addf %73, %8 : vector<4x384xf32>
    %75 = vector.extract_strided_slice %68 {offsets = [0, 0], sizes = [4, 128], strides = [1, 1]} : vector<4x384xf32> to vector<4x128xf32>
    %76 = vector.extract_strided_slice %74 {offsets = [0, 0], sizes = [4, 128], strides = [1, 1]} : vector<4x384xf32> to vector<4x128xf32>
    %77 = arith.addf %75, %76 : vector<4x128xf32>
    %78 = arith.negf %77 : vector<4x128xf32>
    %79 = math.exp %78 : vector<4x128xf32>
    %cst_33 = arith.constant 1.000000e+00 : f32
    %80 = vector.broadcast %cst_33 : f32 to vector<4x128xf32>
    %81 = arith.addf %80, %79 : vector<4x128xf32>
    %82 = arith.divf %80, %81 : vector<4x128xf32>
    %83 = vector.extract_strided_slice %68 {offsets = [0, 128], sizes = [4, 128], strides = [1, 1]} : vector<4x384xf32> to vector<4x128xf32>
    %84 = vector.extract_strided_slice %74 {offsets = [0, 128], sizes = [4, 128], strides = [1, 1]} : vector<4x384xf32> to vector<4x128xf32>
    %85 = arith.addf %83, %84 : vector<4x128xf32>
    %86 = arith.negf %85 : vector<4x128xf32>
    %87 = math.exp %86 : vector<4x128xf32>
    %cst_34 = arith.constant 1.000000e+00 : f32
    %88 = vector.broadcast %cst_34 : f32 to vector<4x128xf32>
    %89 = arith.addf %88, %87 : vector<4x128xf32>
    %90 = arith.divf %88, %89 : vector<4x128xf32>
    %91 = vector.extract_strided_slice %68 {offsets = [0, 256], sizes = [4, 128], strides = [1, 1]} : vector<4x384xf32> to vector<4x128xf32>
    %92 = vector.extract_strided_slice %74 {offsets = [0, 256], sizes = [4, 128], strides = [1, 1]} : vector<4x384xf32> to vector<4x128xf32>
    %93 = arith.mulf %82, %92 : vector<4x128xf32>
    %94 = arith.addf %91, %93 : vector<4x128xf32>
    %95 = math.tanh %94 : vector<4x128xf32>
    %cst_35 = arith.constant 1.000000e+00 : f32
    %96 = vector.broadcast %cst_35 : f32 to vector<4x128xf32>
    %97 = arith.subf %96, %90 : vector<4x128xf32>
    %98 = arith.mulf %97, %95 : vector<4x128xf32>
    %99 = arith.mulf %90, %72 : vector<4x128xf32>
    %100 = arith.addf %98, %99 : vector<4x128xf32>
    %101 = vector.broadcast %71 : vector<4x1xf32> to vector<4x128xf32>
    %102 = arith.mulf %101, %100 : vector<4x128xf32>
    %cst_36 = arith.constant 1.000000e+00 : f32
    %103 = vector.broadcast %cst_36 : f32 to vector<4x1xf32>
    %104 = arith.subf %103, %71 : vector<4x1xf32>
    %105 = vector.broadcast %104 : vector<4x1xf32> to vector<4x128xf32>
    %106 = arith.mulf %105, %72 : vector<4x128xf32>
    %107 = arith.addf %102, %106 : vector<4x128xf32>
    %c0_37 = arith.constant 0 : index
    %c0_38 = arith.constant 0 : index
    %108 = vector.load %arg7[%c0_37, %c0_38] : memref<4x128xf32, #tpu.memory_space<vmem>>, vector<4x128xf32>
    tpu.vector_store %arg7[%c0_37, %c0_38], %107 {strides = array<i32>} : memref<4x128xf32, #tpu.memory_space<vmem>>, vector<4x128xf32>,
    %109 = vector.broadcast %71 : vector<4x1xf32> to vector<4x128xf32>
    %110 = arith.mulf %100, %109 : vector<4x128xf32>
    %c0_39 = arith.constant 0 : index
    %111 = arith.index_cast %65 : i32 to index
    %c0_40 = arith.constant 0 : index
    %c0_41 = arith.constant 0 : index
    %112 = vector.load %arg6[%c0_39, %111, %c0_40, %c0_41] : memref<1x4x4x128xf32, #tpu.memory_space<vmem>>, vector<1x1x4x128xf32>
    %113 = vector.shape_cast %112 : vector<1x1x4x128xf32> to vector<4x128xf32>
    %114 = vector.shape_cast %110 : vector<4x128xf32> to vector<1x1x4x128xf32>
    tpu.vector_store %arg6[%c0_39, %111, %c0_40, %c0_41], %114 {strides = array<i32>} : memref<1x4x4x128xf32, #tpu.memory_space<vmem>>, vector<1x1x4x128xf32>,
    %c2_i32_42 = arith.constant 2 : i32
    %c2_i32_43 = arith.constant 2 : i32
    %115 = arith.muli %c2_i32_43, %c2_i32_42 : i32
    %c3_i32_44 = arith.constant 3 : i32
    %116 = arith.subi %c3_i32_44, %115 : i32
    %117 = arith.muli %arg0, %116 : i32
    %118 = arith.addi %c2_i32_42, %117 : i32
    %c0_45 = arith.constant 0 : index
    %119 = arith.index_cast %118 : i32 to index
    %c0_46 = arith.constant 0 : index
    %c0_47 = arith.constant 0 : index
    %120 = vector.load %arg2[%c0_45, %119, %c0_46, %c0_47] : memref<1x4x4x384xf32, #tpu.memory_space<vmem>>, vector<1x1x4x384xf32>
    %121 = vector.shape_cast %120 : vector<1x1x4x384xf32> to vector<4x384xf32>
    %122 = arith.index_cast %118 : i32 to index
    %c0_48 = arith.constant 0 : index
    %c0_49 = arith.constant 0 : index
    %123 = vector.load %arg3[%122, %c0_48, %c0_49] : memref<4x4x1xf32, #tpu.memory_space<vmem>>, vector<1x4x1xf32>
    %124 = vector.shape_cast %123 : vector<1x4x1xf32> to vector<4x1xf32>
    %c0_50 = arith.constant 0 : index
    %c0_51 = arith.constant 0 : index
    %125 = vector.load %arg7[%c0_50, %c0_51] : memref<4x128xf32, #tpu.memory_space<vmem>>, vector<4x128xf32>
    %cst_52 = arith.constant dense<0.000000e+00> : vector<4x384xf32>
    %126 = tpu.matmul %125, %4, %cst_52 {dimension_numbers = #tpu.dot_dimension_numbers<[1], [0], [0], [1], [0, 0, 1, 1], [], []>} : vector<4x128xf32>, vector<128x384xf32>, vector<4x384xf32> -> vector<4x384xf32>
    %127 = arith.addf %126, %8 : vector<4x384xf32>
    %128 = vector.extract_strided_slice %121 {offsets = [0, 0], sizes = [4, 128], strides = [1, 1]} : vector<4x384xf32> to vector<4x128xf32>
    %129 = vector.extract_strided_slice %127 {offsets = [0, 0], sizes = [4, 128], strides = [1, 1]} : vector<4x384xf32> to vector<4x128xf32>
    %130 = arith.addf %128, %129 : vector<4x128xf32>
    %131 = arith.negf %130 : vector<4x128xf32>
    %132 = math.exp %131 : vector<4x128xf32>
    %cst_53 = arith.constant 1.000000e+00 : f32
    %133 = vector.broadcast %cst_53 : f32 to vector<4x128xf32>
    %134 = arith.addf %133, %132 : vector<4x128xf32>
    %135 = arith.divf %133, %134 : vector<4x128xf32>
    %136 = vector.extract_strided_slice %121 {offsets = [0, 128], sizes = [4, 128], strides = [1, 1]} : vector<4x384xf32> to vector<4x128xf32>
    %137 = vector.extract_strided_slice %127 {offsets = [0, 128], sizes = [4, 128], strides = [1, 1]} : vector<4x384xf32> to vector<4x128xf32>
    %138 = arith.addf %136, %137 : vector<4x128xf32>
    %139 = arith.negf %138 : vector<4x128xf32>
    %140 = math.exp %139 : vector<4x128xf32>
    %cst_54 = arith.constant 1.000000e+00 : f32
    %141 = vector.broadcast %cst_54 : f32 to vector<4x128xf32>
    %142 = arith.addf %141, %140 : vector<4x128xf32>
    %143 = arith.divf %141, %142 : vector<4x128xf32>
    %144 = vector.extract_strided_slice %121 {offsets = [0, 256], sizes = [4, 128], strides = [1, 1]} : vector<4x384xf32> to vector<4x128xf32>
    %145 = vector.extract_strided_slice %127 {offsets = [0, 256], sizes = [4, 128], strides = [1, 1]} : vector<4x384xf32> to vector<4x128xf32>
    %146 = arith.mulf %135, %145 : vector<4x128xf32>
    %147 = arith.addf %144, %146 : vector<4x128xf32>
    %148 = math.tanh %147 : vector<4x128xf32>
    %cst_55 = arith.constant 1.000000e+00 : f32
    %149 = vector.broadcast %cst_55 : f32 to vector<4x128xf32>
    %150 = arith.subf %149, %143 : vector<4x128xf32>
    %151 = arith.mulf %150, %148 : vector<4x128xf32>
    %152 = arith.mulf %143, %125 : vector<4x128xf32>
    %153 = arith.addf %151, %152 : vector<4x128xf32>
    %154 = vector.broadcast %124 : vector<4x1xf32> to vector<4x128xf32>
    %155 = arith.mulf %154, %153 : vector<4x128xf32>
    %cst_56 = arith.constant 1.000000e+00 : f32
    %156 = vector.broadcast %cst_56 : f32 to vector<4x1xf32>
    %157 = arith.subf %156, %124 : vector<4x1xf32>
    %158 = vector.broadcast %157 : vector<4x1xf32> to vector<4x128xf32>
    %159 = arith.mulf %158, %125 : vector<4x128xf32>
    %160 = arith.addf %155, %159 : vector<4x128xf32>
    %c0_57 = arith.constant 0 : index
    %c0_58 = arith.constant 0 : index
    %161 = vector.load %arg7[%c0_57, %c0_58] : memref<4x128xf32, #tpu.memory_space<vmem>>, vector<4x128xf32>
    tpu.vector_store %arg7[%c0_57, %c0_58], %160 {strides = array<i32>} : memref<4x128xf32, #tpu.memory_space<vmem>>, vector<4x128xf32>,
    %162 = vector.broadcast %124 : vector<4x1xf32> to vector<4x128xf32>
    %163 = arith.mulf %153, %162 : vector<4x128xf32>
    %c0_59 = arith.constant 0 : index
    %164 = arith.index_cast %118 : i32 to index
    %c0_60 = arith.constant 0 : index
    %c0_61 = arith.constant 0 : index
    %165 = vector.load %arg6[%c0_59, %164, %c0_60, %c0_61] : memref<1x4x4x128xf32, #tpu.memory_space<vmem>>, vector<1x1x4x128xf32>
    %166 = vector.shape_cast %165 : vector<1x1x4x128xf32> to vector<4x128xf32>
    %167 = vector.shape_cast %163 : vector<4x128xf32> to vector<1x1x4x128xf32>
    tpu.vector_store %arg6[%c0_59, %164, %c0_60, %c0_61], %167 {strides = array<i32>} : memref<1x4x4x128xf32, #tpu.memory_space<vmem>>, vector<1x1x4x128xf32>,
    %c3_i32_62 = arith.constant 3 : i32
    %c2_i32_63 = arith.constant 2 : i32
    %168 = arith.muli %c2_i32_63, %c3_i32_62 : i32
    %c3_i32_64 = arith.constant 3 : i32
    %169 = arith.subi %c3_i32_64, %168 : i32
    %170 = arith.muli %arg0, %169 : i32
    %171 = arith.addi %c3_i32_62, %170 : i32
    %c0_65 = arith.constant 0 : index
    %172 = arith.index_cast %171 : i32 to index
    %c0_66 = arith.constant 0 : index
    %c0_67 = arith.constant 0 : index
    %173 = vector.load %arg2[%c0_65, %172, %c0_66, %c0_67] : memref<1x4x4x384xf32, #tpu.memory_space<vmem>>, vector<1x1x4x384xf32>
    %174 = vector.shape_cast %173 : vector<1x1x4x384xf32> to vector<4x384xf32>
    %175 = arith.index_cast %171 : i32 to index
    %c0_68 = arith.constant 0 : index
    %c0_69 = arith.constant 0 : index
    %176 = vector.load %arg3[%175, %c0_68, %c0_69] : memref<4x4x1xf32, #tpu.memory_space<vmem>>, vector<1x4x1xf32>
    %177 = vector.shape_cast %176 : vector<1x4x1xf32> to vector<4x1xf32>
    %c0_70 = arith.constant 0 : index
    %c0_71 = arith.constant 0 : index
    %178 = vector.load %arg7[%c0_70, %c0_71] : memref<4x128xf32, #tpu.memory_space<vmem>>, vector<4x128xf32>
    %cst_72 = arith.constant dense<0.000000e+00> : vector<4x384xf32>
    %179 = tpu.matmul %178, %4, %cst_72 {dimension_numbers = #tpu.dot_dimension_numbers<[1], [0], [0], [1], [0, 0, 1, 1], [], []>} : vector<4x128xf32>, vector<128x384xf32>, vector<4x384xf32> -> vector<4x384xf32>
    %180 = arith.addf %179, %8 : vector<4x384xf32>
    %181 = vector.extract_strided_slice %174 {offsets = [0, 0], sizes = [4, 128], strides = [1, 1]} : vector<4x384xf32> to vector<4x128xf32>
    %182 = vector.extract_strided_slice %180 {offsets = [0, 0], sizes = [4, 128], strides = [1, 1]} : vector<4x384xf32> to vector<4x128xf32>
    %183 = arith.addf %181, %182 : vector<4x128xf32>
    %184 = arith.negf %183 : vector<4x128xf32>
    %185 = math.exp %184 : vector<4x128xf32>
    %cst_73 = arith.constant 1.000000e+00 : f32
    %186 = vector.broadcast %cst_73 : f32 to vector<4x128xf32>
    %187 = arith.addf %186, %185 : vector<4x128xf32>
    %188 = arith.divf %186, %187 : vector<4x128xf32>
    %189 = vector.extract_strided_slice %174 {offsets = [0, 128], sizes = [4, 128], strides = [1, 1]} : vector<4x384xf32> to vector<4x128xf32>
    %190 = vector.extract_strided_slice %180 {offsets = [0, 128], sizes = [4, 128], strides = [1, 1]} : vector<4x384xf32> to vector<4x128xf32>
    %191 = arith.addf %189, %190 : vector<4x128xf32>
    %192 = arith.negf %191 : vector<4x128xf32>
    %193 = math.exp %192 : vector<4x128xf32>
    %cst_74 = arith.constant 1.000000e+00 : f32
    %194 = vector.broadcast %cst_74 : f32 to vector<4x128xf32>
    %195 = arith.addf %194, %193 : vector<4x128xf32>
    %196 = arith.divf %194, %195 : vector<4x128xf32>
    %197 = vector.extract_strided_slice %174 {offsets = [0, 256], sizes = [4, 128], strides = [1, 1]} : vector<4x384xf32> to vector<4x128xf32>
    %198 = vector.extract_strided_slice %180 {offsets = [0, 256], sizes = [4, 128], strides = [1, 1]} : vector<4x384xf32> to vector<4x128xf32>
    %199 = arith.mulf %188, %198 : vector<4x128xf32>
    %200 = arith.addf %197, %199 : vector<4x128xf32>
    %201 = math.tanh %200 : vector<4x128xf32>
    %cst_75 = arith.constant 1.000000e+00 : f32
    %202 = vector.broadcast %cst_75 : f32 to vector<4x128xf32>
    %203 = arith.subf %202, %196 : vector<4x128xf32>
    %204 = arith.mulf %203, %201 : vector<4x128xf32>
    %205 = arith.mulf %196, %178 : vector<4x128xf32>
    %206 = arith.addf %204, %205 : vector<4x128xf32>
    %207 = vector.broadcast %177 : vector<4x1xf32> to vector<4x128xf32>
    %208 = arith.mulf %207, %206 : vector<4x128xf32>
    %cst_76 = arith.constant 1.000000e+00 : f32
    %209 = vector.broadcast %cst_76 : f32 to vector<4x1xf32>
    %210 = arith.subf %209, %177 : vector<4x1xf32>
    %211 = vector.broadcast %210 : vector<4x1xf32> to vector<4x128xf32>
    %212 = arith.mulf %211, %178 : vector<4x128xf32>
    %213 = arith.addf %208, %212 : vector<4x128xf32>
    %c0_77 = arith.constant 0 : index
    %c0_78 = arith.constant 0 : index
    %214 = vector.load %arg7[%c0_77, %c0_78] : memref<4x128xf32, #tpu.memory_space<vmem>>, vector<4x128xf32>
    tpu.vector_store %arg7[%c0_77, %c0_78], %213 {strides = array<i32>} : memref<4x128xf32, #tpu.memory_space<vmem>>, vector<4x128xf32>,
    %215 = vector.broadcast %177 : vector<4x1xf32> to vector<4x128xf32>
    %216 = arith.mulf %206, %215 : vector<4x128xf32>
    %c0_79 = arith.constant 0 : index
    %217 = arith.index_cast %171 : i32 to index
    %c0_80 = arith.constant 0 : index
    %c0_81 = arith.constant 0 : index
    %218 = vector.load %arg6[%c0_79, %217, %c0_80, %c0_81] : memref<1x4x4x128xf32, #tpu.memory_space<vmem>>, vector<1x1x4x128xf32>
    %219 = vector.shape_cast %218 : vector<1x1x4x128xf32> to vector<4x128xf32>
    %220 = vector.shape_cast %216 : vector<4x128xf32> to vector<1x1x4x128xf32>
    tpu.vector_store %arg6[%c0_79, %217, %c0_80, %c0_81], %220 {strides = array<i32>} : memref<1x4x4x128xf32, #tpu.memory_space<vmem>>, vector<1x1x4x128xf32>,
    %c4_i32 = arith.constant 4 : i32
    return
  }
  func.func @transform_0(%arg0: i32, %arg1: i32) -> (i32, i32, i32, i32) {
    %c2_i32 = arith.constant 2 : i32
    %0 = arith.muli %c2_i32, %arg1 : i32
    %c1_i32 = arith.constant 1 : i32
    %1 = arith.subi %c1_i32, %0 : i32
    %2 = arith.muli %arg0, %1 : i32
    %3 = arith.addi %arg1, %2 : i32
    %c0_i32 = arith.constant 0 : i32
    %c0_i32_0 = arith.constant 0 : i32
    %c0_i32_1 = arith.constant 0 : i32
    return %arg0, %3, %c0_i32, %c0_i32_0 : i32, i32, i32, i32
  }
  func.func @transform_1(%arg0: i32, %arg1: i32) -> (i32, i32, i32) {
    %c2_i32 = arith.constant 2 : i32
    %0 = arith.muli %c2_i32, %arg1 : i32
    %c1_i32 = arith.constant 1 : i32
    %1 = arith.subi %c1_i32, %0 : i32
    %2 = arith.muli %arg0, %1 : i32
    %3 = arith.addi %arg1, %2 : i32
    %c0_i32 = arith.constant 0 : i32
    %c0_i32_0 = arith.constant 0 : i32
    %c0_i32_1 = arith.constant 0 : i32
    return %3, %c0_i32, %c0_i32_0 : i32, i32, i32
  }
  func.func @transform_2(%arg0: i32, %arg1: i32) -> (i32, i32, i32) {
    %c0_i32 = arith.constant 0 : i32
    %c0_i32_0 = arith.constant 0 : i32
    %c0_i32_1 = arith.constant 0 : i32
    return %arg0, %c0_i32, %c0_i32_0 : i32, i32, i32
  }
  func.func @transform_3(%arg0: i32, %arg1: i32) -> (i32, i32, i32) {
    %c0_i32 = arith.constant 0 : i32
    %c0_i32_0 = arith.constant 0 : i32
    %c0_i32_1 = arith.constant 0 : i32
    return %arg0, %c0_i32, %c0_i32_0 : i32, i32, i32
  }
  func.func @transform_4(%arg0: i32, %arg1: i32) -> (i32, i32, i32, i32) {
    %c2_i32 = arith.constant 2 : i32
    %0 = arith.muli %c2_i32, %arg1 : i32
    %c1_i32 = arith.constant 1 : i32
    %1 = arith.subi %c1_i32, %0 : i32
    %2 = arith.muli %arg0, %1 : i32
    %3 = arith.addi %arg1, %2 : i32
    %c0_i32 = arith.constant 0 : i32
    %c0_i32_0 = arith.constant 0 : i32
    %c0_i32_1 = arith.constant 0 : i32
    return %arg0, %3, %c0_i32, %c0_i32_0 : i32, i32, i32, i32
  }
}

</mosaic_0001>

<bundles_post_ra>
// kernel: tpu_custom_call.1
= control target key start
LH: loop header
LB: loop body
LE: loop exit
PB: predicated region body
PF: predicated region fallthrough
CT: control target
= control target key end

     0   :  { %s2948_s0 = inlined_call_operand.hbm [shape: f32[2,8,4,384], index: 0, kind: input, shape index: {}]   ;;  %s2949_s1 = inlined_call_operand.vmem [shape: f32[8,4,1], index: 1, kind: input, shape index: {}]   ;;  %s2950_s2 = inlined_call_operand.hbm [shape: f32[2,128,384], index: 2, kind: input, shape index: {}]   ;;  %s2951_s3 = inlined_call_operand.vmem [shape: f32[2,1,384], index: 3, kind: input, shape index: {}]   ;;  %s2952_s4 = inlined_call_operand.hbm [shape: f32[2,8,4,128], index: 4, kind: output, shape index: {}]  }
   0x1   :  { %2964 = sst [smem:[#allocation19_spill]] %s2948_s0 }
   0x2   :  { %9 = vsyncpa [#allocation4], 0 }
   0x3   :  { %11 = vsyncpa [#allocation4 + $0x1], 0 }
   0x4   :  { %12 = vsyncpa [#allocation7], 0 }
   0x5   :  { %14 = vsyncpa [#allocation7 + $0x1], 0 }
   0x6   :  { %15 = vsyncpa [#allocation5], 0 }
   0x7   :  { %17 = vsyncpa [#allocation5 + $0x1], 0  ;;  %s2286_s15 = smov 0   ;;  %s2288_s16 = smov 0  }
   0x8   :  { %s2290_s17 = smov 0   ;;  %s2292_s18 = smov 0  }
   0x9   :  { %s2294_s19 = smov 0   ;;  %s2296_s20 = smov 0  }
   0xa   :  { %s2298_s21 = smov 0   ;;  %s2300_s22 = smov 0  }
   0xb   :  { %s2302_s23 = smov 0   ;;  %s2304_s24 = smov 0  }
   0xc   :  { %s2306_s25 = smov 0  }
   0xd LB: > { %2965 = sst [smem:[#allocation12_spill]] %s2217_s18  ;;  %s1403_s26 = sadd.s32 4294967295, %s2245_s25   ;;  %s2245_s25 = sphi %s2306_s25, %s23_s25   ;;  %s2241_s24 = sphi %s2304_s24, %s3003_s24   ;;  %s2237_s23 = sphi %s2302_s23, %s2995_s23   ;;  %s2233_s22 = sphi %s2300_s22, %s3002_s22   ;;  %s2229_s21 = sphi %s2298_s21, %s2994_s21   ;;  %s2225_s20 = sphi %s2296_s20, %s2993_s20   ;;  %s2221_s19 = sphi %s2294_s19, %s3001_s19   ;;  %s2217_s18 = sphi %s2292_s18, %s3000_s18   ;;  %s2213_s17 = sphi %s2290_s17, %s2999_s17   ;;  %s2209_s16 = sphi %s2288_s16, %s2998_s16   ;;  %s2205_s15 = sphi %s2286_s15, %s2997_s15  }
   0xe   : > { %2966 = sst [smem:[#allocation13_spill]] %s2225_s20  ;;  %s1404_s27 = sadd.s32 4294967294, %s2245_s25  }
   0xf   : > { %2967 = sst [smem:[#allocation14_spill]] %s2237_s23  ;;  %s32_s28 = sadd.s32 1, %s2237_s23 }
  0x10   : > { %s35_s29 = sadd.s32 1, %s2241_s24  ;;  %p33_p0 = scmp.ge.s32.totalorder %s32_s28, 2 }
  0x11   : > { %s1405_s30 = sshll.u32 %s2237_s23, 1  ;;  %s52_s6 = sadd.s32 1, %s2225_s20 }
  0x12   : > { %s40_s5 = ssub.s32 1, %s1405_s30  ;;  %s3005_s28 = smov (%p33_p0, %s32_s28), 0 }
  0x13   : > { %2968 = sst [smem:[#allocation15_spill]] %s3005_s28  ;;  %s3007_s29 = smov (!%p33_p0, %s35_s29), %s2241_s24 }
  0x14   : > { %s41_s7 = smul.u32 %s2241_s24, %s40_s5  ;;  %s1406_s8 = sshll.u32 %s3005_s28, 1 }
  0x15   : > { %p37_p1 = scmp.ge.s32.totalorder %s3007_s29, 2  ;;  %s44_s9 = ssub.s32 1, %s1406_s8 }
  0x16   : > { %s42_s10 = sadd.s32 %s2237_s23, %s41_s7  ;;  %p59_p2 = scmp.ne.s32.totalorder %s2225_s20, %s2221_s19 }
  0x17   : > { %s3009_s29 = smov (%p37_p1, %s3007_s29), 0  ;;  %p2960_p3 = scmp.eq.s32.totalorder %s2245_s25, 0 }
  0x18   : > { %2969 = sst [smem:[#allocation16_spill]] %s3009_s29  ;;  %p65_p4 = scmp.ne.s32.totalorder %s2221_s19, %s2217_s18 }
  0x19   : > { %s45_s11 = smul.u32 %s44_s9, %s3009_s29  ;;  %s2363_s12 = ssub.s32 %s2241_s24, %s3009_s29 }
  0x1a   : > { %p2370_p5 = por %p2960_p3, %p59_p2  ;;  %p2374_p6 = scmp.eq.s32.totalorder %s1403_s26, 0 }
  0x1b   : > { %s46_s30 = sadd.s32 %s45_s11, %s3005_s28  ;;  %p185_p9 = scmp.eq.s32.totalorder %s1403_s26, 3 }
  0x1c   : > { %s48_s5 = ssub.s32 %s42_s10, %s46_s30  ;;  %p2385_p8 = por %p2374_p6, %p65_p4 }
  0x1d   : > { %s49_s8 = sor.u32 %s48_s5, %s2363_s12  ;;  %p191_p11 = scmp.eq.s32.totalorder %s1404_s27, 3 }
  0x1e   : > { %s2972_s7 = scalar_select %p2385_p8, 1, 0 }
  0x1f   : > { %p50_p10 = scmp.eq.s32.totalorder %s49_s8, 0  ;;  %p2393_p12 = por %p185_p9, %p59_p2 }
  0x20   : > { %p2403_p13 = por %p191_p11, %p65_p4  ;;  %p2959_p0 = scmp.lt.s32.totalorder %s2245_s25, 4 }
  0x21   : > { %s2973_s9 = scalar_select %p2393_p12, 1, 0 }
  0x22   : > { %s2398_s11 = scalar_select %p50_p10, %s2225_s20, %s52_s6  }
  0x23   : > { %s2975_s30 = scalar_select %p2403_p13, 1, 0 }
  0x24   : > { %2974 = sst [smem:[#allocation17_spill]] %s2398_s11  ;;  %s211_s29 = sand.u32 1, %s2225_s20  }
  0x25   : > { %2976 = sst [smem:[#allocation18_spill]] %s2975_s30  ;;  %s1892_s28 = smul.u32 12, %s42_s10 }
  0x26   : > { %s1891_s5 = smul.u32 48, %s211_s29  ;;  %p2414_p1 = pnand %p2959_p0, %p2370_p5 }
  0x27   : > { %s1893_s26 = smul.u32 24, %s2241_s24  ;;  %s2978_s0 = sld [smem:[#allocation19_spill]] }
  0x28   : > { %s215_s8 = scalar_lea.vmem [#allocation3], %s1891_s5  ;;  %s2426_s13 = scalar_lea.sflag [#allocation4], %s211_s29 }
  0x29   : > { %s226_s6 = sadd.s32 %s1893_s26, %s1892_s28  ;;  %s229_s23 = sshll.u32 %s215_s8, 4  ;;  %s2418_s23 = int_to_ptr.vmem [resolvable:$true] %s229_s23 }
  0x2a   : > { %s1416_s11 = sshll.u32 %s226_s6, 6  ;;  %p2061_p5 = pneg %p2414_p1 }
  0x2d   : > { %s2423_s10 = scalar_lea.hbm %s2978_s0, %s1416_s11  ;;  %s2064_s18 = scalar_lea.hbm %s2978_s0, 3072 }
  0x2e   : > { %s2059_s20 = scalar_lea.hbm %s2423_s10, 768  ;;  %p2065_p11 = scmp.lt.u32.totalorder %s2423_s10, %s2978_s0 }
  0x2f   : > { %p2060_p4 = scmp.ne.s32.totalorder %s2423_s10, %s2059_s20  ;;  %p2066_p0 = scmp.lt.u32.totalorder %s2064_s18, %s2059_s20 }
  0x30   : > { %p2068_p7 = scmp.lt.u32.totalorder %s2059_s20, %s2423_s10 }
  0x31   : > { %p2062_p9 = pnand %p2061_p5, %p2060_p4  ;;  %p2067_p3 = por %p2066_p0, %p2065_p11 }
  0x33   : > { %p2063_p10 = pneg %p2062_p9  ;;  %p2069_p2 = por %p2068_p7, %p2067_p3 }
  0x35   : > { %p2070_p13 = pnand %p2069_p2, %p2063_p10 }
  0x37   : > { %2073 = shalt.err (!%p2070_p13)
}
  0x38   : > { %s2074_s29 = scalar_lea.vmem %s2418_s23, 768  ;;  %s2247_s26 = smov [#allocation3]  }
  0x39   : > { %p2075_p4 = scmp.ne.s32.totalorder %s2418_s23, %s2074_s29  ;;  %s2079_s6 = sshll.u32 %s2247_s26, 4  ;;  %s2080_s6 = int_to_ptr.vmem [resolvable:$false] %s2079_s6 }
  0x3a   : > { %s2081_s8 = scalar_lea.vmem %s2080_s6, 1536  ;;  %p2082_p8 = scmp.lt.s32.totalorder %s2418_s23, %s2080_s6 }
  0x3b   : > { %p2077_p9 = pnand %p2075_p4, %p2061_p5  ;;  %p2083_p0 = scmp.lt.s32.totalorder %s2081_s8, %s2074_s29 }
  0x3d   : > { %p2078_p12 = pneg %p2077_p9  ;;  %p2084_p11 = por %p2083_p0, %p2082_p8 }
  0x3f   : > { %p2085_p3 = pnand %p2084_p11, %p2078_p12 }
  0x41   : > { %2088 = shalt.err (!%p2085_p3)
}
  0x42   : > { %s2248_s20 = smov 192   ;;  %s2249_s28 = smov 12  }
  0x43   : > { %1908 = dma.hbm_to_vmem [thread:$0]  (!%p2414_p1), %s2423_s10, 768, %s2418_s23, %s2426_s13, %s2248_s20, %s2248_s20, %s2249_s28  }
  0x44   : > { %p282_p7 = scmp.lt.s32.totalorder %s2245_s25, 5  ;;  %p2979_p8 = scmp.ge.s32.totalorder %s2245_s25, 1 }
  0x45   : > { %s112_s18 = sadd.s32 1, %s2213_s17  ;;  %p119_p13 = scmp.ne.s32.totalorder %s2213_s17, %s2209_s16 }
  0x46   : > { %p2457_p12 = pnand %p2979_p8, %p282_p7  ;;  %p2981_p2 = scmp.eq.s32.totalorder %s2363_s12, 0 }
  0x47   : > { %p2982_p5 = scmp.eq.s32.totalorder %s2245_s25, 0  ;;  %p125_p4 = scmp.ne.s32.totalorder %s2209_s16, %s2205_s15 }
  0x48   : > { %s2467_s11 = scalar_select %p2981_p2, %s2213_s17, %s112_s18  }
  0x49   : > { %p121_p10 = por %p119_p13, %p2982_p5  ;;  %s256_s30 = sand.u32 1, %s2213_s17  }
  0x4a   : > { %s1895_s29 = smul.u32 6144, %s2241_s24  ;;  %p2477_p9 = por %p125_p4, %p2374_p6 }
  0x4b   : > { %s1894_s23 = smul.u32 384, %s256_s30  ;;  %p2984_p1 = scmp.lt.s32.totalorder %s2245_s25, 4 }
  0x4c   : > { %s2983_s27 = scalar_select %p2477_p9, 1, 0 }
  0x4d   : > { %s2484_s26 = scalar_lea.hbm %s2950_s2, %s1895_s29  ;;  %p2488_p0 = pnand %p2984_p1, %p121_p10 }
  0x4e   : > { %s260_s12 = scalar_lea.vmem [#allocation6], %s1894_s23  ;;  %s2494_s6 = scalar_lea.sflag [#allocation7], %s256_s30 }
  0x4f   : > { %s267_s14 = sshll.u32 %s260_s12, 4  ;;  %s2089_s8 = scalar_lea.hbm %s2484_s26, 6144  ;;  %s2492_s14 = int_to_ptr.vmem [resolvable:$true] %s267_s14 }
  0x50   : > { %p2090_p6 = scmp.ne.s32.totalorder %s2484_s26, %s2089_s8  ;;  %p2091_p11 = pneg %p2488_p0 }
  0x51   : > { %s2094_s18 = scalar_lea.hbm %s2950_s2, 12288  ;;  %p2095_p8 = scmp.lt.u32.totalorder %s2484_s26, %s2950_s2 }
  0x52   : > { %p2092_p3 = pnand %p2091_p11, %p2090_p6  ;;  %p2096_p13 = scmp.lt.u32.totalorder %s2094_s18, %s2089_s8 }
  0x53   : > { %p2098_p5 = scmp.lt.u32.totalorder %s2089_s8, %s2484_s26 }
  0x54   : > { %p2093_p7 = pneg %p2092_p3  ;;  %p2097_p2 = por %p2096_p13, %p2095_p8 }
  0x56   : > { %p2099_p10 = por %p2098_p5, %p2097_p2 }
  0x58   : > { %p2100_p4 = pnand %p2099_p10, %p2093_p7 }
  0x5a   : > { %2103 = shalt.err (!%p2100_p4)
}
  0x5b   : > { %s2104_s30 = scalar_lea.vmem %s2492_s14, 6144  ;;  %s2250_s23 = smov [#allocation6]  }
  0x5c   : > { %p2105_p1 = scmp.ne.s32.totalorder %s2492_s14, %s2104_s30  ;;  %s2109_s13 = sshll.u32 %s2250_s23, 4  ;;  %s2110_s13 = int_to_ptr.vmem [resolvable:$false] %s2109_s13 }
  0x5d   : > { %s2111_s12 = scalar_lea.vmem %s2110_s13, 12288  ;;  %p2112_p9 = scmp.lt.s32.totalorder %s2492_s14, %s2110_s13 }
  0x5e   : > { %p2107_p6 = pnand %p2105_p1, %p2091_p11  ;;  %p2113_p8 = scmp.lt.s32.totalorder %s2111_s12, %s2104_s30 }
  0x60   : > { %p2108_p3 = pneg %p2107_p6  ;;  %p2114_p13 = por %p2113_p8, %p2112_p9 }
  0x62   : > { %p2115_p2 = pnand %p2114_p13, %p2108_p3 }
  0x64   : > { %2118 = shalt.err (!%p2115_p2)
}
  0x65   : > { %s2251_s8 = smov 384   ;;  %s2252_s20 = smov 24  }
  0x66   : > { %1911 = dma.hbm_to_vmem [thread:$0]  (!%p2488_p0), %s2484_s26, 6144, %s2492_s14, %s2494_s6, %s2251_s8, %s2251_s8, %s2252_s20  }
  0x67   : > { %286 = sbr.rel (%p2457_p12) target bundleno = 1261 (0x4ed), region = 36  ;;  %s2525_s28 = sand.u32 (!%p2457_p12), 1, %s2221_s19  }
  0x68   : > { %s1896_s18 = smul.u32 (!%p2457_p12), 48, %s2525_s28  ;;  %s289_s29 = scalar_lea.sflag (!%p2457_p12), [#allocation4], %s2525_s28 }
  0x69   : > { %p2986_p9 = scmp.ne.s32.totalorder (!%p2457_p12), %s2972_s7, 0 }
  0x6a   : > { %s2529_s10 = scalar_lea.vmem (!%p2457_p12), [#allocation3], %s1896_s18 }
  0x6e   : > { %2192 = dma.done.wait (%p2986_p9), %s289_s29, 768  }
  0x6f   : > { %2194 = vsyncadd (%p2986_p9), %s289_s29, 4294966528  ;;  %s297_s26 = sand.u32 1, %s2209_s16   ;;  %p2987_p12 = scmp.ne.s32.totalorder %s2983_s27, 0 }
  0x70   : > { %s1897_s5 = smul.u32 384, %s297_s26  ;;  %s298_s15 = scalar_lea.sflag [#allocation7], %s297_s26 }
  0x72   : > { %s2536_s14 = scalar_lea.vmem [#allocation6], %s1897_s5 }
  0x73   : > { %2196 = dma.done.wait (%p2987_p12), %s298_s15, 6144  }
  0x74   : > { %2198 = vsyncadd (%p2987_p12), %s298_s15, 4294961152  ;;  %s1419_s7 = sshll.u32 %s2525_s28, 4  ;;  %s1420_s6 = sshll.u32 %s2229_s21, 1 }
  0x75   : > { %s350_s30 = ssub.s32 1, %s1420_s6  ;;  %p363_p0 = scmp.lt.s32.totalorder %s2233_s22, 1 }
  0x76   : > { %s351_s23 = smul.u32 %s2233_s22, %s350_s30  ;;  %s2562_s30 = scalar_lea.vmem [#allocation8], %s1419_s7 }
  0x77   : > { %s364_s8 = scalar_select %p363_p0, %s2233_s22, 1 }
  0x78   : > { %s352_s13 = sadd.s32 %s2229_s21, %s351_s23  ;;  %p1423_p7 = scmp.ne.s32.totalorder %s2229_s21, 0 }
  0x79   : > { %s2547_s12 = sshll.u32 %s352_s13, 2  ;;  %s1898_s20 = smul.u32 3, %s364_s8  ;;  %v2253_v0 = vmov (!%p1423_p7), 0.0  }
  0x7a   : > { %p354_p11 = scmp.lt.s32.totalorder %s2547_s12, 7  ;;  %375 = sbr.rel (%p1423_p7) target bundleno = 129 (0x81), region = 48  ;;  %376 = vst [vmem:[#allocation2] sm:$0xf] (!%p1423_p7), %v2253_v0 }
  0x7b   : > { %s2560_s6 = scalar_lea.vmem %s2951_s3, %s1898_s20 }
  0x7c   : > { %s355_s27 = scalar_select %p354_p11, %s2547_s12, 7 }
  0x7e   : > { %s1422_s18 = sshll.u32 %s355_s27, 2 }
  0x7f   : > { %s2555_s5 = scalar_lea.vmem %s2949_s1, %s1422_s18 }
  0x81 PF: > { %v378_v1 = vld [vmem:[%s2536_s14 + $0x8] sm:$0xff]  ;;  %v381_v2 = vld [vmem:[%s2536_s14 + $0x20] sm:$0xff]  ;;  %v380_v5 = vld [vmem:[%s2536_s14 + $0x18] sm:$0xff]  ;;  %v2254_v8 = vmov 0.0|0.0   ;;  %v2255_v9 = vmov 0.0   ;;  %vm2256_vm0 = vmmov 0  }
  0x82   : > { %v377_v3 = vld [vmem:[%s2536_s14] sm:$0xff]  ;;  %v2568_v4 = vpack.c.bf16 %v381_v2, %v378_v1  ;;  %v384_v6 = vld [vmem:[%s2536_s14 + $0x38] sm:$0xff]  ;;  %v387_v7 = vld [vmem:[%s2536_s14 + $0x50] sm:$0xff]  ;;  %1699 = vmatprep.subr.bf16.mxu1 %v2254_v8  ;;  %516 = vmatprep.mubr.f32.mxu0 %v2255_v9  ;;  %v2257_v15 = vmov 0   ;;  %s2606_s0 = smul.u32 12, %s2233_s22  ;;  %s1431_s21 = sshll.u32 %s2233_s22, 2 }
  0x83   : > { %v2575_v10 = vpack.c.bf16 %v380_v5, %v377_v3  ;;  %v2577_v11 = vpack.c.bf16 %v387_v7, %v384_v6  ;;  %v383_v12 = vld [vmem:[%s2536_s14 + $0x30] sm:$0xff]  ;;  %v386_v13 = vld [vmem:[%s2536_s14 + $0x48] sm:$0xff]  ;;  %1559 = vmatprep.mubr.msk.f32.mxu1 %vm2256_vm0, %v2255_v9  ;;  %2017 = vset.pattern.permute.xlu0 %v2257_v15  ;;  %v393_v16 = vld [vmem:[%s2536_s14 + $0x80] sm:$0xff]  ;;  %s826_s23 = ssub.s32 2, %s2233_s22  ;;  %s1312_s13 = scalar_lea.vmem %s2555_s5, %s1431_s21 }
  0x84   : > { %v390_v14 = vld [vmem:[%s2536_s14 + $0x68] sm:$0xff]  ;;  %1668 = vmatprep.subr.bf16.mxu0 %v2568_v4  ;;  %2018 = vset.pattern.permute.xlu1 %v2257_v15  ;;  %v2587_v17 = vpack.c.bf16 %v386_v13, %v383_v12  ;;  %v389_v19 = vld [vmem:[%s2536_s14 + $0x60] sm:$0xff]  ;;  %v392_v20 = vld [vmem:[%s2536_s14 + $0x78] sm:$0xff]  ;;  %s449_s7 = scalar_lea.vmem %s2555_s5, %s2606_s0  ;;  %s2644_s8 = sshll.u32 %s826_s23, 2 }
  0x85   : > { %1670 = vmatpush1.bf16.msra.mxu0 %v2575_v10  ;;  %v2590_v18 = vpack.c.bf16 %v393_v16, %v390_v14  ;;  %v396_v21 = vld [vmem:[%s2536_s14 + $0x98] sm:$0xff]  ;;  %v399_v22 = vld [vmem:[%s2536_s14 + $0xb0] sm:$0xff]  ;;  %v2597_v23 = vpack.c.bf16 %v392_v20, %v389_v19  ;;  %v398_v26 = vld [vmem:[%s2536_s14 + $0xa8] sm:$0xff]  ;;  %s833_s27 = scalar_lea.vmem %s2555_s5, %s2644_s8  ;;  %s1444_s20 = smul.u32 4294967284, %s2233_s22 }
  0x86   : > { %1672 = vmatprep.subr.bf16.mxu0 %v2577_v11  ;;  %v2600_v24 = vpack.c.bf16 %v399_v22, %v396_v21  ;;  %v395_v25 = vld [vmem:[%s2536_s14 + $0x90] sm:$0xff]  ;;  %v402_v27 = vld [vmem:[%s2536_s14 + $0xc8] sm:$0xff]  ;;  %v405_v28 = vld [vmem:[%s2536_s14 + $0xe0] sm:$0xff]  ;;  %s632_s26 = scalar_lea.vmem %s2562_s30, %s2606_s0 [#allocation8]  ;;  %s1315_s15 = scalar_lea.vmem %s2562_s30, %s1431_s21 [#allocation8] }
  0x87   : > { %v379_v29 = vld [vmem:[%s2536_s14 + $0x10] sm:$0xff]  ;;  %v382_v30 = vld [vmem:[%s2536_s14 + $0x28] sm:$0xff]  ;;  %v385_v32 = vld [vmem:[%s2536_s14 + $0x40] sm:$0xff]  ;;  %v2616_v33 = vpack.c.bf16 %v398_v26, %v395_v25  ;;  %v2620_v35 = vpack.c.bf16 %v405_v28, %v402_v27  ;;  %s1329_s18 = scalar_lea.vmem %s2555_s5, %s1444_s20  ;;  %s1309_s5 = scalar_lea.vmem %s2529_s10, %s2606_s0 [#allocation3] }
  0x88   : > { %v2611_v31 = vpack.c.bf16 %v382_v30, %v379_v29  ;;  %v388_v34 = vld [vmem:[%s2536_s14 + $0x58] sm:$0xff]  ;;  %v401_v36 = vld [vmem:[%s2536_s14 + $0xc0] sm:$0xff]  ;;  %v411_v40 = vld [vmem:[%s2536_s14 + $0x110] sm:$0xff]  ;;  %v427_v30 = vlaneseq  ;;  %s1016_s21 = scalar_lea.vmem %s2562_s30, %s2644_s8 [#allocation8]  ;;  %p2988_p10 = scmp.ne.s32.totalorder %s2973_s9, 0 }
  0x89   : > { %1674 = vmatpush1.bf16.msra.mxu0 %v2587_v17  ;;  %v404_v37 = vld [vmem:[%s2536_s14 + $0xd8] sm:$0xff]  ;;  %v2626_v39 = vpack.c.bf16 %v388_v34, %v385_v32  ;;  %v391_v41 = vld [vmem:[%s2536_s14 + $0x70] sm:$0xff]  ;;  %v394_v42 = vld [vmem:[%s2536_s14 + $0x88] sm:$0xff] }
  0x8a   : > { %1676 = vmatprep.subr.bf16.mxu0 %v2590_v18  ;;  %v408_v38 = vld [vmem:[%s2536_s14 + $0xf8] sm:$0xff]  ;;  %1701 = vmatpush3.bf16.msra.mxu1 %v2611_v31  ;;  %v2639_v43 = vpack.c.bf16 %v404_v37, %v401_v36  ;;  %v407_v44 = vld [vmem:[%s2536_s14 + $0xf0] sm:$0xff]  ;;  %v410_v47 = vld [vmem:[%s2536_s14 + $0x108] sm:$0xff]  ;;  %v2652_v49 = vpack.c.bf16 %v394_v42, %v391_v41  ;;  %v428_v32 = vshrl.u32 %v427_v30, 7 }
  0x8b   : > { %1702 = vmatprep.subr.bf16.mxu1 %v2254_v8  ;;  %v450_v45 = vld [vmem:[%s449_s7] sm:$0xf]  ;;  %v2647_v46 = vpack.c.bf16 %v411_v40, %v408_v38  ;;  %v414_v48 = vld [vmem:[%s2536_s14 + $0x128] sm:$0xff]  ;;  %v1432_v50 = vld [vmem:[%s1312_s13 + $0x4] sm:$0xf]  ;;  %v2662_v56 = vpack.c.bf16 %v410_v47, %v407_v44  ;;  %s1441_s7 = smul.u32 4294967260, %s2233_s22 }
  0x8c   : > { %v417_v51 = vld [vmem:[%s2536_s14 + $0x140] sm:$0xff]  ;;  %v400_v53 = vld [vmem:[%s2536_s14 + $0xb8] sm:$0xff]  ;;  %619 = vperm.xlu0 %2017, %v450_v45   ;;  %v623_v54 = vsub.f32 1.0, %v450_v45  ;;  %v815_v55 = vsub.f32 1.0, %v1432_v50  ;;  %811 = vperm.xlu1 %2018, %v1432_v50   ;;  %v423_v61 = vld [vmem:[%s2536_s14 + $0x170] sm:$0xff]  ;;  %v429_v34 = vsub.s32 0, %v428_v32 }
  0x8d   : > { %1678 = vmatpush1.bf16.msra.mxu0 %v2597_v23  ;;  %v397_v52 = vld [vmem:[%s2536_s14 + $0xa0] sm:$0xff]  ;;  %v2666_v58 = vpack.c.bf16 %v417_v51, %v414_v48  ;;  %v416_v59 = vld [vmem:[%s2536_s14 + $0x138] sm:$0xff]  ;;  %v403_v63 = vld [vmem:[%s2536_s14 + $0xd0] sm:$0xff]  ;;  %v433_v37 = vsub.s32 1, %v428_v32 }
  0x8e   : > { %1680 = vmatprep.subr.bf16.mxu0 %v2600_v24  ;;  %1704 = vmatpush3.bf16.msra.mxu1 %v2626_v39  ;;  %v413_v57 = vld [vmem:[%s2536_s14 + $0x120] sm:$0xff]  ;;  %v420_v60 = vld [vmem:[%s2536_s14 + $0x158] sm:$0xff]  ;;  %v2672_v62 = vpack.c.bf16 %v400_v53, %v397_v52  ;;  %v406_v0 = vld [vmem:[%s2536_s14 + $0xe8] sm:$0xff] }
  0x8f   : > { %1705 = vmatprep.subr.bf16.mxu1 %v2254_v8  ;;  %v834_v1 = vld [vmem:[%s833_s27] sm:$0xf]  ;;  %v2681_v3 = vpack.c.bf16 %v416_v59, %v413_v57  ;;  %v2684_v5 = vpack.c.bf16 %v423_v61, %v420_v60  ;;  %v419_v6 = vld [vmem:[%s2536_s14 + $0x150] sm:$0xff]  ;;  %v422_v7 = vld [vmem:[%s2536_s14 + $0x168] sm:$0xff]  ;;  %v2689_v12 = vpack.c.bf16 %v406_v0, %v403_v63  ;;  %v437_v60 = vsub.s32 2, %v428_v32  ;;  %s1231_s27 = sshll.u32 %s2562_s30, 4  ;;  %s2885_s27 = int_to_ptr.vmem [resolvable:$true] %s1231_s27 }
  0x90   : > { %626 = vperm.xlu0 %2017, %v623_v54   ;;  %v1007_v2 = vsub.f32 1.0, %v834_v1  ;;  %818 = vperm.xlu1 %2018, %v815_v55   ;;  %v409_v13 = vld [vmem:[%s2536_s14 + $0x100] sm:$0xff]  ;;  %v412_v14 = vld [vmem:[%s2536_s14 + $0x118] sm:$0xff]  ;;  %v1445_v15 = vld [vmem:[%s1329_s18 + $0xc] sm:$0xf]  ;;  %v2695_v19 = vpack.c.bf16 %v422_v7, %v419_v6  ;;  %s1333_s18 = scalar_lea.vmem %s2562_s30, %s1444_s20 [#allocation8]  ;;  %s2258_s30 = smov [#allocation8]  }
  0x91   : > { %1682 = vmatpush1.bf16.msra.mxu0 %v2616_v33  ;;  %v1200_v16 = vsub.f32 1.0, %v1445_v15  ;;  %v2699_v20 = vpack.c.bf16 %v412_v14, %v409_v13  ;;  %v415_v21 = vld [vmem:[%s2536_s14 + $0x130] sm:$0xff]  ;;  %v418_v22 = vld [vmem:[%s2536_s14 + $0x148] sm:$0xff]  ;;  %v2705_v25 = vld [vmem:[#allocation2] sm:$0xf]  ;;  %s2123_s20 = sshll.u32 %s2258_s30, 4  ;;  %s2124_s20 = int_to_ptr.vmem [resolvable:$false] %s2123_s20 }
  0x92   : > { %1684 = vmatprep.subr.bf16.mxu0 %v2620_v35  ;;  %1707 = vmatpush3.bf16.msra.mxu1 %v2652_v49  ;;  %v2708_v26 = vpack.c.bf16 %v418_v22, %v415_v21  ;;  %v421_v27 = vld [vmem:[%s2536_s14 + $0x160] sm:$0xff]  ;;  %v424_v28 = vld [vmem:[%s2536_s14 + $0x178] sm:$0xff]  ;;  %s1457_s14 = smul.u32 36, %s2233_s22  ;;  %p2126_p6 = scmp.lt.s32.totalorder %s2885_s27, %s2124_s20 }
  0x93   : > { %1708 = vmatprep.subr.bf16.mxu1 %v2254_v8  ;;  %v2718_v29 = vpack.c.bf16 %v424_v28, %v421_v27  ;;  %v425_v36 = vld [vmem:[%s2560_s6] sm:$0x7]  ;;  %s1458_s6 = smul.u32 12, %s826_s23  ;;  %s1325_s23 = scalar_lea.vmem %s2529_s10, %s1441_s7 [#allocation3] }
  0x94   : > { %1003 = vperm.xlu0 %2017, %v834_v1   ;;  %1010 = vperm.xlu1 %2018, %v1007_v2   ;;  %s445_s29 = scalar_lea.vmem %s2529_s10, %s1457_s14 [#allocation3]  ;;  %v2760_v38 = vrot.slane %v425_v36, %v429_v34  ;;  %v2762_v40 = vrot.slane %v425_v36, %v433_v37  ;;  %v2766_v61 = vrot.slane %v425_v36, %v437_v60 }
  0x95   : > { %1686 = vmatpush1.bf16.msra.mxu0 %v2639_v43  ;;  %v446_v41 = vld [vmem:[%s445_s29] sm:$0xff]  ;;  %v447_v6 = vld [vmem:[%s445_s29 + $0x8] sm:$0xf]  ;;  %s829_s0 = scalar_lea.vmem %s2529_s10, %s1458_s6 [#allocation3]  ;;  %s1453_s10 = sshll.u32 %s2233_s22, 3 }
  0x96   : > { %1688 = vmatprep.subr.bf16.mxu0 %v2647_v46  ;;  %1710 = vmatpush3.bf16.msra.mxu1 %v2672_v62  ;;  %v601_v48 = vrot.slane %v446_v41, 4  ;;  %s1228_s13 = sadd.s32 %s1453_s10, %s2547_s12  ;;  %s1212_s12 = scalar_lea.sflag [#allocation5], %s2525_s28 }
  0x97   : > { %1711 = vmatprep.subr.bf16.mxu1 %v2254_v8  ;;  %s1454_s8 = sshll.u32 %s1228_s13, 6  ;;  %s2119_s22 = scalar_lea.vmem %s2885_s27, 256 }
  0x98   : > { %1196 = vperm.xlu0 %2017, %v1445_v15   ;;  %1203 = vperm.xlu1 %2018, %v1200_v16   ;;  %p2120_p5 = scmp.ne.s32.totalorder %s2885_s27, %s2119_s22 }
  0x99   : > { %1690 = vmatpush1.bf16.msra.mxu0 %v2662_v56 }
  0x9a   : > { %1692 = vmatprep.subr.bf16.mxu0 %v2666_v58  ;;  %1713 = vmatpush3.bf16.msra.mxu1 %v2689_v12  ;;  %p2121_p4 = pnand %p2120_p5, %p2988_p10 }
  0x9b   : > { %1714 = vmatprep.subr.bf16.mxu1 %v2254_v8 }
  0x9c   : > { %p2122_p1 = pneg %p2121_p4 }
  0x9d   : > { %1694 = vmatpush1.bf16.msra.mxu0 %v2681_v3 }
  0x9e   : > { %1696 = vmatprep.subr.bf16.mxu0 %v2684_v5  ;;  %1716 = vmatpush3.bf16.msra.mxu1 %v2699_v20 }
  0x9f   : > { %1717 = vmatprep.subr.bf16.mxu1 %v2254_v8 }
  0xa1   : > { %1698 = vmatpush1.bf16.msra.mxu0 %v2695_v19 }
  0xa2   : > { %1724 = vmatprep.subr.bf16.mxu0 %v2568_v4  ;;  %1719 = vmatpush3.bf16.msra.mxu1 %v2708_v26 }
  0xa3   : > { %1720 = vmatprep.subr.bf16.mxu1 %v2254_v8 }
  0xa4   : > { %517 = vmatmul.mubr.f32.vlgmr.msra.gmra.mrb[0].mxu0 %v2705_v25 }
  0xa5   : > { %1726 = vmatpush1.bf16.msra.mxu0 %v2575_v10  ;;  %708 = vmatprep.mubr.f32.mxu0 %v2255_v9 }
  0xa6   : > { %1728 = vmatprep.subr.bf16.mxu0 %v2577_v11  ;;  %1722 = vmatpush3.bf16.msra.mxu1 %v2718_v29 }
  0xa7   : > { %1755 = vmatprep.subr.bf16.mxu1 %v2254_v8 }
  0xa9   : > { %1730 = vmatpush1.bf16.msra.mxu0 %v2587_v17  ;;  %1560 = vmatmul.mubr.f32.vlgmr.msra.gmra.mrb[0].mxu1 %v2705_v25 }
  0xaa   : > { %1732 = vmatprep.subr.bf16.mxu0 %v2590_v18  ;;  %1757 = vmatpush3.bf16.msra.mxu1 %v2611_v31 }
  0xab   : > { %1758 = vmatprep.subr.bf16.mxu1 %v2254_v8  ;;  %1594 = vmatprep.mubr.msk.f32.mxu1 %vm2256_vm0, %v2255_v9 }
  0xad   : > { %1734 = vmatpush1.bf16.msra.mxu0 %v2597_v23 }
  0xae   : > { %1736 = vmatprep.subr.bf16.mxu0 %v2600_v24  ;;  %1760 = vmatpush3.bf16.msra.mxu1 %v2626_v39 }
  0xaf   : > { %1761 = vmatprep.subr.bf16.mxu1 %v2254_v8 }
  0xb1   : > { %1738 = vmatpush1.bf16.msra.mxu0 %v2616_v33 }
  0xb2   : > { %1740 = vmatprep.subr.bf16.mxu0 %v2620_v35  ;;  %1763 = vmatpush3.bf16.msra.mxu1 %v2652_v49 }
  0xb3   : > { %1764 = vmatprep.subr.bf16.mxu1 %v2254_v8 }
  0xb5   : > { %1742 = vmatpush1.bf16.msra.mxu0 %v2639_v43 }
  0xb6   : > { %1744 = vmatprep.subr.bf16.mxu0 %v2647_v46  ;;  %1766 = vmatpush3.bf16.msra.mxu1 %v2672_v62 }
  0xb7   : > { %1767 = vmatprep.subr.bf16.mxu1 %v2254_v8 }
  0xb9   : > { %1746 = vmatpush1.bf16.msra.mxu0 %v2662_v56 }
  0xba   : > { %1748 = vmatprep.subr.bf16.mxu0 %v2666_v58  ;;  %1769 = vmatpush3.bf16.msra.mxu1 %v2689_v12 }
  0xbb   : > { %1770 = vmatprep.subr.bf16.mxu1 %v2254_v8 }
  0xbd   : > { %1750 = vmatpush1.bf16.msra.mxu0 %v2681_v3 }
  0xbe   : > { %1752 = vmatprep.subr.bf16.mxu0 %v2684_v5  ;;  %1772 = vmatpush3.bf16.msra.mxu1 %v2699_v20 }
  0xbf   : > { %1773 = vmatprep.subr.bf16.mxu1 %v2254_v8 }
  0xc1   : > { %1754 = vmatpush1.bf16.msra.mxu0 %v2695_v19 }
  0xc2   : > { %1780 = vmatprep.subr.bf16.mxu0 %v2568_v4  ;;  %1775 = vmatpush3.bf16.msra.mxu1 %v2708_v26 }
  0xc3   : > { %1776 = vmatprep.subr.bf16.mxu1 %v2254_v8 }
  0xc6   : > { %1778 = vmatpush3.bf16.msra.mxu1 %v2718_v29 }
  0xc7   : > { %1811 = vmatprep.subr.bf16.mxu1 %v2254_v8 }
 0x10b   : > { %v620_v15 = vpop.permute.xlu0 %619 }
 0x10f   : > { %v627_v30 = vpop.permute.xlu0 %626 }
 0x110   : > { %v629_v34 = vmul.f32 %v627_v30, %v2705_v25 }
 0x177   : > { %v518_v42 = vpop.f32.mrb[0].mxu0 }
 0x178   : > { %v519_v44 = vadd.f32 %v518_v42, %v2760_v38  ;;  %v520_v45 = vpop.f32.mrb[1].mxu0 }
 0x179   : > { %v521_v47 = vadd.f32 %v520_v45, %v2762_v40 }
 0x17a   : > { %v593_v50 = vadd.f32 %v519_v44, %v446_v41 }
 0x17b   : > { %v603_v52 = vadd.f32 %v601_v48, %v521_v47 }
 0x17c   : > { %v1427_v51 = vmul.f32 -1.442695, %v593_v50  ;;  %v589_v53 = vpop.f32.mrb[0].mxu1 }
 0x17d   : > { %v1428_v54 = vmul.f32 -1.442695, %v603_v52  ;;  %v1561_v55 = vpop.f32.mrb[1].mxu1  ;;  %v590_v1 = vadd.f32 %v589_v53, %v2766_v61 }
 0x17e   : > { %2019 = vpow2.f32 %v1427_v51 }
 0x17f   : > { %2021 = vpow2.f32 %v1428_v54 }
 0x188   : > { %v2020_v57 = vpop.eup %2019 }
 0x189   : > { %v597_v59 = vadd.f32 1.0, %v2020_v57  ;;  %v2022_v63 = vpop.eup %2021 }
 0x18a   : > { %v607_v0 = vadd.f32 1.0, %v2022_v63 }
 0x18b   : > { %2023 = vrcp.f32 %v597_v59 }
 0x18c   : > { %2025 = vrcp.f32 %v607_v0  ;;  %v1430_v0 = vld [vmem:[%s1309_s5 + $0x14] sm:$0xf] }
 0x195   : > { %v2024_v2 = vpop.eup %2023 }
 0x196   : > { %v610_v7 = vmul.f32 %v2024_v2, %v590_v1  ;;  %v2026_v14 = vpop.eup %2025 }
 0x197   : > { %v613_v16 = vsub.f32 1.0, %v2026_v14  ;;  %v615_v27 = vmul.f32 %v2026_v14, %v2705_v25  ;;  %v1429_v25 = vld [vmem:[%s1309_s5 + $0xc] sm:$0xff]  ;;  %s2125_s5 = scalar_lea.vmem %s2124_s20, 512 }
 0x198   : > { %v611_v13 = vadd.f32 %v610_v7, %v447_v6  ;;  %v793_v50 = vrot.slane %v1429_v25, 4  ;;  %v812_v7 = vpop.permute.xlu1 %811  ;;  %p2127_p3 = scmp.lt.s32.totalorder %s2125_s5, %s2119_s22 }
 0x19a   : > { %2027 = vtanh.f32 %v611_v13  ;;  %p2128_p8 = por %p2127_p3, %p2126_p6 }
 0x19c   : > { %p2129_p13 = pnand %p2128_p8, %p2122_p1 }
 0x1a4   : > { %v2028_v21 = vpop.eup %2027 }
 0x1a5   : > { %v614_v22 = vmul.f32 %v2028_v21, %v613_v16  ;;  %v819_v21 = vpop.permute.xlu1 %818 }
 0x1a7   : > { %v616_v28 = vadd.f32 %v615_v27, %v614_v22 }
 0x1a9   : > { %v622_v32 = vmul.f32 %v620_v15, %v616_v28 }
 0x1ab   : > { %633 = vst [vmem:[%s632_s26] sm:$0xf] %v622_v32  ;;  %v630_v36 = vadd.f32 %v629_v34, %v622_v32  ;;  %s2883_s26 = scalar_lea.hbm %s2952_s4, %s1454_s8 }
 0x1ad   : > { %631 = vst [vmem:[#allocation2] sm:$0xf] %v630_v36 }
 0x1b4   : > { %v2773_v37 = vld [vmem:[#allocation2] sm:$0xf] }
 0x1b5   : > { %709 = vmatmul.mubr.f32.vlgmr.msra.gmra.mrb[2].mxu0 %v2773_v37  ;;  %1595 = vmatmul.mubr.f32.vlgmr.msra.gmra.mrb[2].mxu1 %v2773_v37  ;;  %v821_v27 = vmul.f32 %v819_v21, %v2773_v37 }
 0x1b6   : > { %1782 = vmatpush1.bf16.msra.mxu0 %v2575_v10  ;;  %1813 = vmatpush3.bf16.msra.mxu1 %v2611_v31 }
 0x1b7   : > { %1784 = vmatprep.subr.bf16.mxu0 %v2577_v11  ;;  %1814 = vmatprep.subr.bf16.mxu1 %v2254_v8 }
 0x1b8   : > { %900 = vmatprep.mubr.f32.mxu0 %v2255_v9  ;;  %1629 = vmatprep.mubr.msk.f32.mxu1 %vm2256_vm0, %v2255_v9 }
 0x1ba   : > { %1786 = vmatpush1.bf16.msra.mxu0 %v2587_v17  ;;  %1816 = vmatpush3.bf16.msra.mxu1 %v2626_v39 }
 0x1bb   : > { %1788 = vmatprep.subr.bf16.mxu0 %v2590_v18  ;;  %1817 = vmatprep.subr.bf16.mxu1 %v2254_v8 }
 0x1be   : > { %1790 = vmatpush1.bf16.msra.mxu0 %v2597_v23  ;;  %1819 = vmatpush3.bf16.msra.mxu1 %v2652_v49 }
 0x1bf   : > { %1792 = vmatprep.subr.bf16.mxu0 %v2600_v24  ;;  %1820 = vmatprep.subr.bf16.mxu1 %v2254_v8 }
 0x1c2   : > { %1794 = vmatpush1.bf16.msra.mxu0 %v2616_v33  ;;  %1822 = vmatpush3.bf16.msra.mxu1 %v2672_v62 }
 0x1c3   : > { %1796 = vmatprep.subr.bf16.mxu0 %v2620_v35  ;;  %1823 = vmatprep.subr.bf16.mxu1 %v2254_v8 }
 0x1c6   : > { %1798 = vmatpush1.bf16.msra.mxu0 %v2639_v43  ;;  %1825 = vmatpush3.bf16.msra.mxu1 %v2689_v12 }
 0x1c7   : > { %1800 = vmatprep.subr.bf16.mxu0 %v2647_v46  ;;  %1826 = vmatprep.subr.bf16.mxu1 %v2254_v8 }
 0x1ca   : > { %1802 = vmatpush1.bf16.msra.mxu0 %v2662_v56  ;;  %1828 = vmatpush3.bf16.msra.mxu1 %v2699_v20 }
 0x1cb   : > { %1804 = vmatprep.subr.bf16.mxu0 %v2666_v58  ;;  %1829 = vmatprep.subr.bf16.mxu1 %v2254_v8 }
 0x1ce   : > { %1806 = vmatpush1.bf16.msra.mxu0 %v2681_v3  ;;  %1831 = vmatpush3.bf16.msra.mxu1 %v2708_v26 }
 0x1cf   : > { %1808 = vmatprep.subr.bf16.mxu0 %v2684_v5  ;;  %1832 = vmatprep.subr.bf16.mxu1 %v2254_v8 }
 0x1d2   : > { %1810 = vmatpush1.bf16.msra.mxu0 %v2695_v19  ;;  %1834 = vmatpush3.bf16.msra.mxu1 %v2718_v29 }
 0x1d3   : > { %1836 = vmatprep.subr.bf16.mxu0 %v2568_v4  ;;  %1867 = vmatprep.subr.bf16.mxu1 %v2254_v8 }
 0x288   : > { %v710_v41 = vpop.f32.mrb[2].mxu0  ;;  %v781_v42 = vpop.f32.mrb[2].mxu1 }
 0x289   : > { %v711_v44 = vadd.f32 %v710_v41, %v2760_v38  ;;  %v712_v45 = vpop.f32.mrb[3].mxu0  ;;  %v1596_v47 = vpop.f32.mrb[3].mxu1  ;;  %v782_v60 = vadd.f32 %v781_v42, %v2766_v61 }
 0x28a   : > { %v713_v48 = vadd.f32 %v712_v45, %v2762_v40  ;;  %v1442_v47 = vld [vmem:[%s1325_s23 + $0x24] sm:$0xff] }
 0x28b   : > { %v785_v51 = vadd.f32 %v1429_v25, %v711_v44  ;;  %v1011_v25 = vpop.permute.xlu1 %1010 }
 0x28c   : > { %v795_v53 = vadd.f32 %v793_v50, %v713_v48 }
 0x28d   : > { %v1433_v52 = vmul.f32 -1.442695, %v785_v51 }
 0x28e   : > { %v1434_v54 = vmul.f32 -1.442695, %v795_v53 }
 0x28f   : > { %2029 = vpow2.f32 %v1433_v52 }
 0x290   : > { %2031 = vpow2.f32 %v1434_v54 }
 0x299   : > { %v2030_v4 = vpop.eup %2029 }
 0x29a   : > { %v789_v55 = vadd.f32 1.0, %v2030_v4  ;;  %v2032_v57 = vpop.eup %2031  ;;  %v1178_v4 = vrot.slane %v1442_v47, 4 }
 0x29b   : > { %v799_v59 = vadd.f32 1.0, %v2032_v57 }
 0x29c   : > { %2033 = vrcp.f32 %v789_v55 }
 0x29d   : > { %2035 = vrcp.f32 %v799_v59 }
 0x2a6   : > { %v2034_v63 = vpop.eup %2033 }
 0x2a7   : > { %v802_v1 = vmul.f32 %v2034_v63, %v782_v60  ;;  %v2036_v6 = vpop.eup %2035 }
 0x2a8   : > { %v805_v13 = vsub.f32 1.0, %v2036_v6  ;;  %v807_v16 = vmul.f32 %v2036_v6, %v2773_v37  ;;  %v1004_v37 = vpop.permute.xlu0 %1003  ;;  %v1443_v6 = vld [vmem:[%s1325_s23 + $0x2c] sm:$0xf] }
 0x2a9   : > { %v803_v2 = vadd.f32 %v1430_v0, %v802_v1 }
 0x2ab   : > { %2037 = vtanh.f32 %v803_v2 }
 0x2b5   : > { %v2038_v14 = vpop.eup %2037 }
 0x2b6   : > { %v806_v15 = vmul.f32 %v2038_v14, %v805_v13 }
 0x2b8   : > { %v808_v22 = vadd.f32 %v807_v16, %v806_v15 }
 0x2ba   : > { %v814_v28 = vmul.f32 %v812_v7, %v808_v22 }
 0x2bc   : > { %v822_v30 = vadd.f32 %v821_v27, %v814_v28  ;;  %1436 = vst [vmem:[%s1315_s15 + $0x4] sm:$0xf] %v814_v28  ;;  %v1197_v27 = vpop.permute.xlu0 %1196  ;;  %v1204_v28 = vpop.permute.xlu1 %1203 }
 0x2be   : > { %823 = vst [vmem:[#allocation2] sm:$0xf] %v822_v30 }
 0x2c5   : > { %v2822_v32 = vld [vmem:[#allocation2] sm:$0xf] }
 0x2c6   : > { %901 = vmatmul.mubr.f32.vlgmr.msra.gmra.mrb[4].mxu0 %v2822_v32  ;;  %1630 = vmatmul.mubr.f32.vlgmr.msra.gmra.mrb[4].mxu1 %v2822_v32  ;;  %v1013_v41 = vmul.f32 %v1011_v25, %v2822_v32 }
 0x2c7   : > { %1838 = vmatpush1.bf16.msra.mxu0 %v2575_v10  ;;  %1869 = vmatpush3.bf16.msra.mxu1 %v2611_v31 }
 0x2c8   : > { %1840 = vmatprep.subr.bf16.mxu0 %v2577_v11  ;;  %1870 = vmatprep.subr.bf16.mxu1 %v2254_v8 }
 0x2c9   : > { %1093 = vmatprep.mubr.f32.mxu0 %v2255_v9  ;;  %1664 = vmatprep.mubr.msk.f32.mxu1 %vm2256_vm0, %v2255_v9  ;;  %v830_v9 = vld [vmem:[%s829_s0] sm:$0xff] }
 0x2ca   : > { %v985_v31 = vrot.slane %v830_v9, 4 }
 0x2cb   : > { %1842 = vmatpush1.bf16.msra.mxu0 %v2587_v17  ;;  %1872 = vmatpush3.bf16.msra.mxu1 %v2626_v39 }
 0x2cc   : > { %1844 = vmatprep.subr.bf16.mxu0 %v2590_v18  ;;  %1873 = vmatprep.subr.bf16.mxu1 %v2254_v8 }
 0x2cf   : > { %1846 = vmatpush1.bf16.msra.mxu0 %v2597_v23  ;;  %1875 = vmatpush3.bf16.msra.mxu1 %v2652_v49 }
 0x2d0   : > { %1848 = vmatprep.subr.bf16.mxu0 %v2600_v24  ;;  %1876 = vmatprep.subr.bf16.mxu1 %v2254_v8 }
 0x2d3   : > { %1850 = vmatpush1.bf16.msra.mxu0 %v2616_v33  ;;  %1878 = vmatpush3.bf16.msra.mxu1 %v2672_v62 }
 0x2d4   : > { %1852 = vmatprep.subr.bf16.mxu0 %v2620_v35  ;;  %1879 = vmatprep.subr.bf16.mxu1 %v2254_v8 }
 0x2d7   : > { %1854 = vmatpush1.bf16.msra.mxu0 %v2639_v43  ;;  %1881 = vmatpush3.bf16.msra.mxu1 %v2689_v12 }
 0x2d8   : > { %1856 = vmatprep.subr.bf16.mxu0 %v2647_v46  ;;  %1882 = vmatprep.subr.bf16.mxu1 %v2254_v8 }
 0x2db   : > { %1858 = vmatpush1.bf16.msra.mxu0 %v2662_v56  ;;  %1884 = vmatpush3.bf16.msra.mxu1 %v2699_v20 }
 0x2dc   : > { %1860 = vmatprep.subr.bf16.mxu0 %v2666_v58  ;;  %1885 = vmatprep.subr.bf16.mxu1 %v2254_v8 }
 0x2df   : > { %1862 = vmatpush1.bf16.msra.mxu0 %v2681_v3  ;;  %1887 = vmatpush3.bf16.msra.mxu1 %v2708_v26  ;;  %v831_v3 = vld [vmem:[%s829_s0 + $0x8] sm:$0xf] }
 0x2e0   : > { %1864 = vmatprep.subr.bf16.mxu0 %v2684_v5  ;;  %1888 = vmatprep.subr.bf16.mxu1 %v2254_v8 }
 0x2e3   : > { %1866 = vmatpush1.bf16.msra.mxu0 %v2695_v19  ;;  %1890 = vmatpush3.bf16.msra.mxu1 %v2718_v29 }
 0x399   : > { %v902_v10 = vpop.f32.mrb[4].mxu0  ;;  %v973_v11 = vpop.f32.mrb[4].mxu1 }
 0x39a   : > { %v903_v17 = vadd.f32 %v902_v10, %v2760_v38  ;;  %v904_v18 = vpop.f32.mrb[5].mxu0  ;;  %v1631_v23 = vpop.f32.mrb[5].mxu1  ;;  %v974_v58 = vadd.f32 %v973_v11, %v2766_v61 }
 0x39b   : > { %v905_v24 = vadd.f32 %v904_v18, %v2762_v40 }
 0x39c   : > { %v977_v33 = vadd.f32 %v903_v17, %v830_v9 }
 0x39d   : > { %v987_v8 = vadd.f32 %v985_v31, %v905_v24 }
 0x39e   : > { %v1439_v35 = vmul.f32 -1.442695, %v977_v33 }
 0x39f   : > { %v1440_v39 = vmul.f32 -1.442695, %v987_v8 }
 0x3a0   : > { %2039 = vpow2.f32 %v1439_v35 }
 0x3a1   : > { %2041 = vpow2.f32 %v1440_v39 }
 0x3aa   : > { %v2040_v43 = vpop.eup %2039 }
 0x3ab   : > { %v981_v46 = vadd.f32 1.0, %v2040_v43  ;;  %v2042_v49 = vpop.eup %2041 }
 0x3ac   : > { %v991_v56 = vadd.f32 1.0, %v2042_v49 }
 0x3ad   : > { %2043 = vrcp.f32 %v981_v46 }
 0x3ae   : > { %2045 = vrcp.f32 %v991_v56 }
 0x3b7   : > { %v2044_v62 = vpop.eup %2043 }
 0x3b8   : > { %v994_v5 = vmul.f32 %v2044_v62, %v974_v58  ;;  %v2046_v19 = vpop.eup %2045 }
 0x3b9   : > { %v997_v20 = vsub.f32 1.0, %v2046_v19  ;;  %v999_v34 = vmul.f32 %v2046_v19, %v2822_v32 }
 0x3ba   : > { %v995_v12 = vadd.f32 %v994_v5, %v831_v3 }
 0x3bc   : > { %2047 = vtanh.f32 %v995_v12 }
 0x3c6   : > { %v2048_v26 = vpop.eup %2047 }
 0x3c7   : > { %v998_v29 = vmul.f32 %v2048_v26, %v997_v20 }
 0x3c9   : > { %v1000_v36 = vadd.f32 %v999_v34, %v998_v29 }
 0x3cb   : > { %v1006_v42 = vmul.f32 %v1004_v37, %v1000_v36 }
 0x3cd   : > { %v1014_v44 = vadd.f32 %v1013_v41, %v1006_v42  ;;  %1017 = vst [vmem:[%s1016_s21] sm:$0xf] %v1006_v42 }
 0x3cf   : > { %1015 = vst [vmem:[#allocation2] sm:$0xf] %v1014_v44 }
 0x3d6   : > { %v1028_v45 = vld [vmem:[#allocation2] sm:$0xf] }
 0x3d7   : > { %1094 = vmatmul.mubr.f32.vlgmr.msra.gmra.mrb[6].mxu0 %v1028_v45  ;;  %1665 = vmatmul.mubr.f32.vlgmr.msra.gmra.mrb[6].mxu1 %v1028_v45  ;;  %v1206_v30 = vmul.f32 %v1204_v28, %v1028_v45 }
 0x4aa   : > { %v1095_v48 = vpop.f32.mrb[6].mxu0  ;;  %v1166_v50 = vpop.f32.mrb[6].mxu1 }
 0x4ab   : > { %v1096_v51 = vadd.f32 %v1095_v48, %v2760_v38  ;;  %v1097_v52 = vpop.f32.mrb[7].mxu0  ;;  %v1666_v53 = vpop.f32.mrb[7].mxu1  ;;  %v1167_v38 = vadd.f32 %v1166_v50, %v2766_v61 }
 0x4ac   : > { %v1098_v54 = vadd.f32 %v1097_v52, %v2762_v40 }
 0x4ad   : > { %v1170_v55 = vadd.f32 %v1442_v47, %v1096_v51 }
 0x4ae   : > { %v1180_v59 = vadd.f32 %v1178_v4, %v1098_v54 }
 0x4af   : > { %v1446_v57 = vmul.f32 -1.442695, %v1170_v55 }
 0x4b0   : > { %v1447_v60 = vmul.f32 -1.442695, %v1180_v59 }
 0x4b1   : > { %2049 = vpow2.f32 %v1446_v57 }
 0x4b2   : > { %2051 = vpow2.f32 %v1447_v60 }
 0x4bb   : > { %v2050_v63 = vpop.eup %2049 }
 0x4bc   : > { %v1174_v0 = vadd.f32 1.0, %v2050_v63  ;;  %v2052_v1 = vpop.eup %2051 }
 0x4bd   : > { %v1184_v2 = vadd.f32 1.0, %v2052_v1 }
 0x4be   : > { %2053 = vrcp.f32 %v1174_v0 }
 0x4bf   : > { %2055 = vrcp.f32 %v1184_v2 }
 0x4c8   : > { %v2054_v40 = vpop.eup %2053 }
 0x4c9   : > { %v1187_v7 = vmul.f32 %v2054_v40, %v1167_v38  ;;  %v2056_v14 = vpop.eup %2055 }
 0x4ca   : > { %v1190_v15 = vsub.f32 1.0, %v2056_v14  ;;  %v1192_v22 = vmul.f32 %v2056_v14, %v1028_v45 }
 0x4cb   : > { %v1188_v13 = vadd.f32 %v1443_v6, %v1187_v7 }
 0x4cd   : > { %2057 = vtanh.f32 %v1188_v13 }
 0x4d7   : > { %v2058_v16 = vpop.eup %2057 }
 0x4d8   : > { %v1191_v21 = vmul.f32 %v2058_v16, %v1190_v15 }
 0x4da   : > { %v1193_v61 = vadd.f32 %v1192_v22, %v1191_v21 }
 0x4dc   : > { %v1199_v32 = vmul.f32 %v1197_v27, %v1193_v61 }
 0x4de   : > { %v1207_v9 = vadd.f32 %v1206_v30, %v1199_v32  ;;  %1449 = vst [vmem:[%s1333_s18 + $0xc] sm:$0xf] %v1199_v32 }
 0x4df   : > { %2132 = shalt.err (!%p2129_p13)
}
 0x4e0   : > { %s2133_s15 = scalar_lea.hbm %s2883_s26, 256  ;;  %s2137_s21 = scalar_lea.hbm %s2952_s4, 1024 }
 0x4e1   : > { %p2134_p2 = scmp.ne.s32.totalorder %s2883_s26, %s2133_s15  ;;  %p2138_p0 = scmp.lt.u32.totalorder %s2883_s26, %s2952_s4 }
 0x4e2   : > { %p2139_p11 = scmp.lt.u32.totalorder %s2137_s21, %s2133_s15  ;;  %p2141_p5 = scmp.lt.u32.totalorder %s2133_s15, %s2883_s26 }
 0x4e3   : > { %p2135_p9 = pnand %p2134_p2, %p2988_p10 }
 0x4e4   : > { %p2140_p7 = por %p2139_p11, %p2138_p0 }
 0x4e5   : > { %p2136_p12 = pneg %p2135_p9 }
 0x4e6   : > { %p2142_p4 = por %p2141_p5, %p2140_p7 }
 0x4e8   : > { %p2143_p1 = pnand %p2142_p4, %p2136_p12 }
 0x4ea   : > { %2146 = shalt.err (!%p2143_p1)
}
 0x4eb   : > { %s2259_s10 = smov 64   ;;  %s2260_s13 = smov 4   ;;  %1208 = vst [vmem:[#allocation2] sm:$0xf] %v1207_v9 }
 0x4ec   : > { %1903 = dma.vmem_to_hbm [thread:$0]  (%p2988_p10), %s2885_s27, 256, %s2883_s26, %s1212_s12, %s2259_s10, %s2259_s10, %s2260_s13  }
 0x4ed PF: > { %s2989_s8 = sld [smem:[#allocation12_spill]]  ;;  %s2990_s18 = sld [smem:[#allocation18_spill]] }
 0x4ee   : > { %p1917_p6 = scmp.ge.s32.totalorder %s2245_s25, 2 }
 0x4f3   : > { %s1246_s14 = sand.u32 1, %s2989_s8   ;;  %p2991_p3 = scmp.ne.s32.totalorder %s2990_s18, 0 }
 0x4f4   : > { %s1247_s29 = scalar_lea.sflag [#allocation5], %s1246_s14 }
 0x4f5   : > { %p1913_p8 = pnand %p1917_p6, %p2991_p3 }
 0x4f7   : > { %2200 = dma.done.wait (!%p1913_p8), %s1247_s29, 256  }
 0x4f8   : > { %2202 = vsyncadd (!%p1913_p8), %s1247_s29, 4294967040  ;;  %s23_s25 = sadd.s32 1, %s2245_s25   ;;  %s2992_s9 = sld [smem:[#allocation13_spill]] }
 0x4f9   : > { %p20_p13 = scmp.ge.s32.totalorder %s23_s25, 6   ;;  %s2993_s20 = sld [smem:[#allocation17_spill]] }
 0x4fa   : > { %s2994_s21 = sld [smem:[#allocation14_spill]]  ;;  %s2995_s23 = sld [smem:[#allocation15_spill]] }
 0x4fb   : > { %s2996_s28 = sld [smem:[#allocation16_spill]]  ;;  %s2997_s15 = smov %s2209_s16 }
 0x4fc   : > { %s2998_s16 = smov %s2213_s17  ;;  %s2999_s17 = smov %s2467_s11 }
 0x4fd   : > { %s3000_s18 = smov %s2221_s19  ;;  %s3002_s22 = smov %s2241_s24 }
 0x4fe   : > { %s3001_s19 = smov %s2992_s9  ;;  %22 = sbr.rel (!%p20_p13) target bundleno = 13 (0xd), region = 116 }
 0x501   : > { %s3003_s24 = smov %s2996_s28 }
 0x505   :  { %1252 = vsyncpa [#allocation4], 1 }
 0x506   :  { %1254 = vsyncpa [#allocation4 + $0x1], 1 }
 0x507   :  { %1255 = vsyncpa [#allocation7], 1 }
 0x508   :  { %1257 = vsyncpa [#allocation7 + $0x1], 1 }
 0x509   :  { %1258 = vsyncpa [#allocation5], 1 }
 0x50a   :  { %1260 = vsyncpa [#allocation5 + $0x1], 1 }

</bundles_post_ra>
